<compile_context>
chip_gen: v5e
topology: v5e:2x2
jax: 0.10.0
libtpu: 0.0.40
codegen_flags: <defaults>
</compile_context>

<pallas_src>
import functools
import math

import numpy as np

import jax
import jax.numpy as jnp
from jax.experimental import pallas as pl
from jax.experimental.pallas import tpu as pltpu

_INV_SQRT2 = 1.0 / math.sqrt(2.0)


def _gelu(v):
    # Exact (erf-based) GELU == torch.nn.GELU() default.
    return 0.5 * v * (1.0 + jax.lax.erf(v * _INV_SQRT2))


# ---------------------------------------------------------------------------
# Kernel
# ---------------------------------------------------------------------------
def _mlpc_kernel(x_ref, m_ref, w1_ref, b1_ref, wc_ref, bc_ref, w2_ref, b2_ref,
                 o_ref, *, H, W):
    # Per grid step (Bt images stacked along the lane axis, L = Bt*HW lanes):
    #   x_ref : (C_in, L)    channel-in-sublane, pixel-in-lane
    #   m_ref : (9, L)       precomputed 0/1 boundary masks per tap
    #   w1_ref: (hidden, C_in)   torch (out, in) layout
    #   b1_ref: (hidden, 1)
    #   wc_ref: (hidden, 9)      depthwise 3x3 kernel, flattened as ky*3+kx
    #   bc_ref: (hidden, 1)
    #   w2_ref: (C_out, hidden)
    #   b2_ref: (C_out, 1)
    #   o_ref : (C_out, L)       lane-dense store
    c_in = x_ref.shape[0]
    L = x_ref.shape[1]

    x = x_ref[...].astype(jnp.float32)                      # (C_in, L)
    w1 = w1_ref[...].astype(jnp.float32)                    # (hidden, C_in)

    # fc1 on the VPU: K = C_in is tiny, so do C_in broadcast FMAs instead of
    # pushing a nearly-empty contraction through the MXU.
    h = w1[:, 0:1] * x[0:1, :]                               # (hidden, L)
    for c in range(1, c_in):
        h = h + w1[:, c:c + 1] * x[c:c + 1, :]
    h = _gelu(h + b1_ref[...].astype(jnp.float32))           # (hidden, L)

    # Depthwise 3x3 conv (padding=1): center tap + 8 lane-rolled taps with
    # precomputed boundary masks.  Roll-wrap lanes (image/row boundaries) are
    # exactly the masked-to-zero lanes, so stacking Bt images along the lane
    # axis stays correct.
    wc = wc_ref[...].astype(jnp.float32)                     # (hidden, 9)
    m = m_ref[...]                                           # (9, L) 0/1 f32
    acc = h * wc[:, 4:5]                                     # center: dy=dx=0
    for k in range(9):
        if k == 4:
            continue
        dy, dx = k // 3 - 1, k % 3 - 1
        s = dy * W + dx                                      # src pixel offset
        rolled = pltpu.roll(h, shift=(-s) % L, axis=1)       # rolled[p]=h[p+s]
        acc = acc + (rolled * m[k:k + 1, :]) * wc[:, k:k + 1]
    g = _gelu(acc + bc_ref[...].astype(jnp.float32))          # (hidden, L)

    # fc2 on the MXU (K = hidden): (C_out, hidden) @ (hidden, L).
    # Operands are kept in the weight dtype (bf16-friendly); accumulate in f32.
    y = jnp.dot(w2_ref[...], g.astype(w2_ref.dtype),
                preferred_element_type=jnp.float32)
    o_ref[...] = (y + b2_ref[...].astype(jnp.float32)).astype(o_ref.dtype)


# ---------------------------------------------------------------------------
# Host-side helpers (hoisted out of the per-call forward path)
# ---------------------------------------------------------------------------
def prepare_mlpc_params(w1, b1, wc, bc, w2, b2, dtype=jnp.float32):
    """One-time weight prep (casts + reshapes). Torch layouts:
       w1 (hidden, C_in), b1 (hidden,), wc (hidden, 1|_, 3, 3) depthwise,
       bc (hidden,), w2 (C_out, hidden), b2 (C_out,)."""
    hidden = w1.shape[0]
    c_out = w2.shape[0]
    return (jnp.asarray(w1, dtype),
            jnp.asarray(b1, dtype).reshape(hidden, 1),
            jnp.asarray(wc, dtype).reshape(hidden, 9),
            jnp.asarray(bc, dtype).reshape(hidden, 1),
            jnp.asarray(w2, dtype),
            jnp.asarray(b2, dtype).reshape(c_out, 1))


@functools.lru_cache(maxsize=None)
def _boundary_masks(H, W, bt):
    """(9, bt*H*W) f32 0/1 validity masks for the 3x3 taps (padding=1)."""
    p = np.arange(H * W)
    py, px = p // W, p % W
    rows = []
    for ky in range(3):
        for kx in range(3):
            dy, dx = ky - 1, kx - 1
            rows.append((py + dy >= 0) & (py + dy < H) &
                        (px + dx >= 0) & (px + dx < W))
    m = np.stack(rows).astype(np.float32)          # (9, HW)
    m = np.tile(m, (1, bt))                        # (9, bt*HW)
    return jnp.asarray(m)


def _pick_batch_block(B, hidden, HW, c_in, c_out,
                      vmem_budget_bytes=16 * 1024 * 1024):
    """Largest per-step image count that fits a VMEM budget, preferring >=2
    grid steps (keeps both v7x TensorCores busy)."""
    per_image = (4 * hidden + 2 * (c_in + c_out)) * HW * 4   # rough f32 live set

    def ok(bt):
        return (B % bt == 0
                and bt * per_image <= vmem_budget_bytes
                and (bt == B or (bt * HW) % 128 == 0))       # lane-dense blocks

    cands = [bt for bt in range(1, B + 1) if ok(bt)]
    two_step = [bt for bt in cands if B // bt >= 2]
    pool = two_step if two_step else cands
    return max(pool) if pool else 1


# ---------------------------------------------------------------------------
# Forward wrapper
# ---------------------------------------------------------------------------
def mlpc_pallas(x, params, *, H, W, batch_block=None):
    """x: (B, HW, C_in); params from prepare_mlpc_params. Returns (B, HW, C_out)."""
    w1, b1, wc, bc, w2, b2 = params
    B, HW, C_in = x.shape
    assert HW == H * W, "token count must equal H*W"
    hidden = w1.shape[0]
    C_out = w2.shape[0]

    Bt = batch_block or _pick_batch_block(B, hidden, HW, C_in, C_out)
    assert B % Bt == 0
    L = Bt * HW
    # Lane-dense blocks (unmasked loads/stores) need L % 128 == 0 unless the
    # block covers the whole batch axis.
    assert Bt == B or L % 128 == 0

    masks = _boundary_masks(H, W, Bt)

    # Channel-major tokens: (C_in, B*HW) -> contiguous HW-wide DMA rows and no
    # 4->128 lane padding of the input tile.
    x_cm = jnp.transpose(x, (2, 0, 1)).reshape(C_in, B * HW)

    kernel = functools.partial(_mlpc_kernel, H=H, W=W)

    out_cm = pl.pallas_call(
        kernel,
        out_shape=jax.ShapeDtypeStruct((C_out, B * HW), x.dtype),
        grid_spec=pl.GridSpec(
            grid=(B // Bt,),
            in_specs=[
                pl.BlockSpec((C_in, L), lambda i: (0, i)),       # x (chan-major)
                pl.BlockSpec((9, L), lambda i: (0, 0)),          # boundary masks
                pl.BlockSpec((hidden, C_in), lambda i: (0, 0)),  # w1
                pl.BlockSpec((hidden, 1), lambda i: (0, 0)),     # b1
                pl.BlockSpec((hidden, 9), lambda i: (0, 0)),     # wc
                pl.BlockSpec((hidden, 1), lambda i: (0, 0)),     # bc
                pl.BlockSpec((C_out, hidden), lambda i: (0, 0)), # w2
                pl.BlockSpec((C_out, 1), lambda i: (0, 0)),      # b2
            ],
            out_specs=pl.BlockSpec((C_out, L), lambda i: (0, i)),
        ),
        compiler_params=pltpu.CompilerParams(
            dimension_semantics=("parallel",),
            vmem_limit_bytes=32 * 1024 * 1024),
    )(x_cm, masks, w1, b1, wc, bc, w2, b2)

    # Module contract is tokens-major (B, HW, C_out).  With C_out = 4 a
    # tokens-major in-kernel store would be lane-masked, so the kernel emits
    # channel-major and we pay one small wrapper transpose instead.
    return jnp.transpose(out_cm.reshape(C_out, B, HW), (1, 2, 0))


# ---------------------------------------------------------------------------
# Pure-JAX reference (same math as the PyTorch module)
# ---------------------------------------------------------------------------
def mlpc_reference(x, w1, b1, wc, bc, w2, b2, *, H, W):
    B, HW, _ = x.shape
    hidden = w1.shape[0]
    h = jnp.einsum("bpc,hc->bph", x.astype(jnp.float32), w1) + b1
    h = _gelu(h)
    himg = jnp.transpose(h.reshape(B, H, W, hidden), (0, 3, 1, 2))   # NCHW
    conv = jax.lax.conv_general_dilated(
        himg, wc.reshape(hidden, 1, 3, 3),
        window_strides=(1, 1), padding=((1, 1), (1, 1)),
        feature_group_count=hidden,
        dimension_numbers=("NCHW", "OIHW", "NCHW"))
    conv = conv + bc.reshape(1, hidden, 1, 1)
    g = _gelu(conv)
    g = jnp.transpose(g, (0, 2, 3, 1)).reshape(B, HW, hidden)
    y = jnp.einsum("bph,oh->bpo", g, w2) + b2
    return y.astype(x.dtype)


if __name__ == "__main__":
    in_features = 4
    hidden_features = 32
    out_features = 4      # out_features = out_features or in_features
    B, H, W = 2, 16, 16
    HW = H * W

    key = jax.random.PRNGKey(0)
    kx, k1a, k1b, kca, kcb, k2a, k2b = jax.random.split(key, 7)

    x = jax.random.normal(kx, (B, HW, in_features), dtype=jnp.float32)

    def u(k, shape, bound):
        return jax.random.uniform(k, shape, jnp.float32, -bound, bound)

    # Deterministic, torch-default-like uniform inits.
    w1 = u(k1a, (hidden_features, in_features), 1.0 / math.sqrt(in_features))
    b1 = u(k1b, (hidden_features,), 1.0 / math.sqrt(in_features))
    wc = u(kca, (hidden_features, 3, 3), 1.0 / 3.0)    # depthwise fan_in = 9
    bc = u(kcb, (hidden_features,), 1.0 / 3.0)
    w2 = u(k2a, (out_features, hidden_features), 1.0 / math.sqrt(hidden_features))
    b2 = u(k2b, (out_features,), 1.0 / math.sqrt(hidden_features))

    # One-time parameter prep (hoisted out of the forward path).
    params = prepare_mlpc_params(w1, b1, wc, bc, w2, b2)

    out = mlpc_pallas(x, params, H=H, W=W)
    out = jax.block_until_ready(out)

    ref = mlpc_reference(x, w1, b1, wc, bc, w2, b2, H=H, W=W)
    assert out.shape == (B, HW, out_features)
    assert jnp.allclose(out, ref, atol=1e-4, rtol=1e-4), float(
        jnp.max(jnp.abs(out - ref)))

    print("KERNEL_OK")
</pallas_src>

<mosaic_0001>
module attributes {stable_mosaic.version = 11 : i64} {
  func.func @_mlpc_kernel(%arg0: i32, %arg1: memref<4x256xf32, #tpu.memory_space<vmem>>, %arg2: memref<9x256xf32, #tpu.memory_space<vmem>>, %arg3: memref<32x4xf32, #tpu.memory_space<vmem>>, %arg4: memref<32x1xf32, #tpu.memory_space<vmem>>, %arg5: memref<32x9xf32, #tpu.memory_space<vmem>>, %arg6: memref<32x1xf32, #tpu.memory_space<vmem>>, %arg7: memref<4x32xf32, #tpu.memory_space<vmem>>, %arg8: memref<4x1xf32, #tpu.memory_space<vmem>>, %arg9: memref<4x256xf32, #tpu.memory_space<vmem>>) attributes {dimension_semantics = [#tpu.dimension_semantics<parallel>], iteration_bounds = array<i64: 2>, scalar_prefetch = 0 : i64, scratch_operands = 0 : i64, tpu.core_type = #tpu.core_type<tc>, window_params = [{transform_indices = @transform_0, window_bounds = array<i64: 4, 256>}, {pipeline_mode = #tpu.pipeline_mode<synchronous>, transform_indices = @transform_1, window_bounds = array<i64: 9, 256>}, {pipeline_mode = #tpu.pipeline_mode<synchronous>, transform_indices = @transform_2, window_bounds = array<i64: 32, 4>}, {pipeline_mode = #tpu.pipeline_mode<synchronous>, transform_indices = @transform_3, window_bounds = array<i64: 32, 1>}, {pipeline_mode = #tpu.pipeline_mode<synchronous>, transform_indices = @transform_4, window_bounds = array<i64: 32, 9>}, {pipeline_mode = #tpu.pipeline_mode<synchronous>, transform_indices = @transform_5, window_bounds = array<i64: 32, 1>}, {pipeline_mode = #tpu.pipeline_mode<synchronous>, transform_indices = @transform_6, window_bounds = array<i64: 4, 32>}, {pipeline_mode = #tpu.pipeline_mode<synchronous>, transform_indices = @transform_7, window_bounds = array<i64: 4, 1>}, {transform_indices = @transform_8, window_bounds = array<i64: 4, 256>}]} {
    %c0 = arith.constant 0 : index
    %c0_0 = arith.constant 0 : index
    %0 = vector.load %arg1[%c0, %c0_0] : memref<4x256xf32, #tpu.memory_space<vmem>>, vector<4x256xf32>
    %c0_1 = arith.constant 0 : index
    %c0_2 = arith.constant 0 : index
    %1 = vector.load %arg3[%c0_1, %c0_2] : memref<32x4xf32, #tpu.memory_space<vmem>>, vector<32x4xf32>
    %2 = vector.extract_strided_slice %1 {offsets = [0, 0], sizes = [32, 1], strides = [1, 1]} : vector<32x4xf32> to vector<32x1xf32>
    %3 = vector.extract_strided_slice %0 {offsets = [0, 0], sizes = [1, 256], strides = [1, 1]} : vector<4x256xf32> to vector<1x256xf32>
    %4 = vector.broadcast %2 : vector<32x1xf32> to vector<32x256xf32>
    %5 = vector.broadcast %3 : vector<1x256xf32> to vector<32x256xf32>
    %6 = arith.mulf %4, %5 : vector<32x256xf32>
    %7 = vector.extract_strided_slice %1 {offsets = [0, 1], sizes = [32, 1], strides = [1, 1]} : vector<32x4xf32> to vector<32x1xf32>
    %8 = vector.extract_strided_slice %0 {offsets = [1, 0], sizes = [1, 256], strides = [1, 1]} : vector<4x256xf32> to vector<1x256xf32>
    %9 = vector.broadcast %7 : vector<32x1xf32> to vector<32x256xf32>
    %10 = vector.broadcast %8 : vector<1x256xf32> to vector<32x256xf32>
    %11 = arith.mulf %9, %10 : vector<32x256xf32>
    %12 = arith.addf %6, %11 : vector<32x256xf32>
    %13 = vector.extract_strided_slice %1 {offsets = [0, 2], sizes = [32, 1], strides = [1, 1]} : vector<32x4xf32> to vector<32x1xf32>
    %14 = vector.extract_strided_slice %0 {offsets = [2, 0], sizes = [1, 256], strides = [1, 1]} : vector<4x256xf32> to vector<1x256xf32>
    %15 = vector.broadcast %13 : vector<32x1xf32> to vector<32x256xf32>
    %16 = vector.broadcast %14 : vector<1x256xf32> to vector<32x256xf32>
    %17 = arith.mulf %15, %16 : vector<32x256xf32>
    %18 = arith.addf %12, %17 : vector<32x256xf32>
    %19 = vector.extract_strided_slice %1 {offsets = [0, 3], sizes = [32, 1], strides = [1, 1]} : vector<32x4xf32> to vector<32x1xf32>
    %20 = vector.extract_strided_slice %0 {offsets = [3, 0], sizes = [1, 256], strides = [1, 1]} : vector<4x256xf32> to vector<1x256xf32>
    %21 = vector.broadcast %19 : vector<32x1xf32> to vector<32x256xf32>
    %22 = vector.broadcast %20 : vector<1x256xf32> to vector<32x256xf32>
    %23 = arith.mulf %21, %22 : vector<32x256xf32>
    %24 = arith.addf %18, %23 : vector<32x256xf32>
    %c0_3 = arith.constant 0 : index
    %c0_4 = arith.constant 0 : index
    %25 = vector.load %arg4[%c0_3, %c0_4] : memref<32x1xf32, #tpu.memory_space<vmem>>, vector<32x1xf32>
    %26 = vector.broadcast %25 : vector<32x1xf32> to vector<32x256xf32>
    %27 = arith.addf %24, %26 : vector<32x256xf32>
    %cst = arith.constant 5.000000e-01 : f32
    %28 = vector.broadcast %cst : f32 to vector<32x256xf32>
    %29 = arith.mulf %28, %27 : vector<32x256xf32>
    %cst_5 = arith.constant 0.707106769 : f32
    %30 = vector.broadcast %cst_5 : f32 to vector<32x256xf32>
    %31 = arith.mulf %27, %30 : vector<32x256xf32>
    %32 = math.erf %31 : vector<32x256xf32>
    %cst_6 = arith.constant 1.000000e+00 : f32
    %33 = vector.broadcast %cst_6 : f32 to vector<32x256xf32>
    %34 = arith.addf %33, %32 : vector<32x256xf32>
    %35 = arith.mulf %29, %34 : vector<32x256xf32>
    %c0_7 = arith.constant 0 : index
    %c0_8 = arith.constant 0 : index
    %36 = vector.load %arg5[%c0_7, %c0_8] : memref<32x9xf32, #tpu.memory_space<vmem>>, vector<32x9xf32>
    %c0_9 = arith.constant 0 : index
    %c0_10 = arith.constant 0 : index
    %37 = vector.load %arg2[%c0_9, %c0_10] : memref<9x256xf32, #tpu.memory_space<vmem>>, vector<9x256xf32>
    %38 = vector.extract_strided_slice %36 {offsets = [0, 4], sizes = [32, 1], strides = [1, 1]} : vector<32x9xf32> to vector<32x1xf32>
    %39 = vector.broadcast %38 : vector<32x1xf32> to vector<32x256xf32>
    %40 = arith.mulf %35, %39 : vector<32x256xf32>
    %c17_i32 = arith.constant 17 : i32
    %41 = tpu.dynamic_rotate %35 by %c17_i32 dim 1 : vector<32x256xf32>, i32 -> vector<32x256xf32>
    %42 = vector.extract_strided_slice %37 {offsets = [0, 0], sizes = [1, 256], strides = [1, 1]} : vector<9x256xf32> to vector<1x256xf32>
    %43 = vector.broadcast %42 : vector<1x256xf32> to vector<32x256xf32>
    %44 = arith.mulf %41, %43 : vector<32x256xf32>
    %45 = vector.extract_strided_slice %36 {offsets = [0, 0], sizes = [32, 1], strides = [1, 1]} : vector<32x9xf32> to vector<32x1xf32>
    %46 = vector.broadcast %45 : vector<32x1xf32> to vector<32x256xf32>
    %47 = arith.mulf %44, %46 : vector<32x256xf32>
    %48 = arith.addf %40, %47 : vector<32x256xf32>
    %c16_i32 = arith.constant 16 : i32
    %49 = tpu.dynamic_rotate %35 by %c16_i32 dim 1 : vector<32x256xf32>, i32 -> vector<32x256xf32>
    %50 = vector.extract_strided_slice %37 {offsets = [1, 0], sizes = [1, 256], strides = [1, 1]} : vector<9x256xf32> to vector<1x256xf32>
    %51 = vector.broadcast %50 : vector<1x256xf32> to vector<32x256xf32>
    %52 = arith.mulf %49, %51 : vector<32x256xf32>
    %53 = vector.extract_strided_slice %36 {offsets = [0, 1], sizes = [32, 1], strides = [1, 1]} : vector<32x9xf32> to vector<32x1xf32>
    %54 = vector.broadcast %53 : vector<32x1xf32> to vector<32x256xf32>
    %55 = arith.mulf %52, %54 : vector<32x256xf32>
    %56 = arith.addf %48, %55 : vector<32x256xf32>
    %c15_i32 = arith.constant 15 : i32
    %57 = tpu.dynamic_rotate %35 by %c15_i32 dim 1 : vector<32x256xf32>, i32 -> vector<32x256xf32>
    %58 = vector.extract_strided_slice %37 {offsets = [2, 0], sizes = [1, 256], strides = [1, 1]} : vector<9x256xf32> to vector<1x256xf32>
    %59 = vector.broadcast %58 : vector<1x256xf32> to vector<32x256xf32>
    %60 = arith.mulf %57, %59 : vector<32x256xf32>
    %61 = vector.extract_strided_slice %36 {offsets = [0, 2], sizes = [32, 1], strides = [1, 1]} : vector<32x9xf32> to vector<32x1xf32>
    %62 = vector.broadcast %61 : vector<32x1xf32> to vector<32x256xf32>
    %63 = arith.mulf %60, %62 : vector<32x256xf32>
    %64 = arith.addf %56, %63 : vector<32x256xf32>
    %c1_i32 = arith.constant 1 : i32
    %65 = tpu.dynamic_rotate %35 by %c1_i32 dim 1 : vector<32x256xf32>, i32 -> vector<32x256xf32>
    %66 = vector.extract_strided_slice %37 {offsets = [3, 0], sizes = [1, 256], strides = [1, 1]} : vector<9x256xf32> to vector<1x256xf32>
    %67 = vector.broadcast %66 : vector<1x256xf32> to vector<32x256xf32>
    %68 = arith.mulf %65, %67 : vector<32x256xf32>
    %69 = vector.extract_strided_slice %36 {offsets = [0, 3], sizes = [32, 1], strides = [1, 1]} : vector<32x9xf32> to vector<32x1xf32>
    %70 = vector.broadcast %69 : vector<32x1xf32> to vector<32x256xf32>
    %71 = arith.mulf %68, %70 : vector<32x256xf32>
    %72 = arith.addf %64, %71 : vector<32x256xf32>
    %c255_i32 = arith.constant 255 : i32
    %73 = tpu.dynamic_rotate %35 by %c255_i32 dim 1 : vector<32x256xf32>, i32 -> vector<32x256xf32>
    %74 = vector.extract_strided_slice %37 {offsets = [5, 0], sizes = [1, 256], strides = [1, 1]} : vector<9x256xf32> to vector<1x256xf32>
    %75 = vector.broadcast %74 : vector<1x256xf32> to vector<32x256xf32>
    %76 = arith.mulf %73, %75 : vector<32x256xf32>
    %77 = vector.extract_strided_slice %36 {offsets = [0, 5], sizes = [32, 1], strides = [1, 1]} : vector<32x9xf32> to vector<32x1xf32>
    %78 = vector.broadcast %77 : vector<32x1xf32> to vector<32x256xf32>
    %79 = arith.mulf %76, %78 : vector<32x256xf32>
    %80 = arith.addf %72, %79 : vector<32x256xf32>
    %c241_i32 = arith.constant 241 : i32
    %81 = tpu.dynamic_rotate %35 by %c241_i32 dim 1 : vector<32x256xf32>, i32 -> vector<32x256xf32>
    %82 = vector.extract_strided_slice %37 {offsets = [6, 0], sizes = [1, 256], strides = [1, 1]} : vector<9x256xf32> to vector<1x256xf32>
    %83 = vector.broadcast %82 : vector<1x256xf32> to vector<32x256xf32>
    %84 = arith.mulf %81, %83 : vector<32x256xf32>
    %85 = vector.extract_strided_slice %36 {offsets = [0, 6], sizes = [32, 1], strides = [1, 1]} : vector<32x9xf32> to vector<32x1xf32>
    %86 = vector.broadcast %85 : vector<32x1xf32> to vector<32x256xf32>
    %87 = arith.mulf %84, %86 : vector<32x256xf32>
    %88 = arith.addf %80, %87 : vector<32x256xf32>
    %c240_i32 = arith.constant 240 : i32
    %89 = tpu.dynamic_rotate %35 by %c240_i32 dim 1 : vector<32x256xf32>, i32 -> vector<32x256xf32>
    %90 = vector.extract_strided_slice %37 {offsets = [7, 0], sizes = [1, 256], strides = [1, 1]} : vector<9x256xf32> to vector<1x256xf32>
    %91 = vector.broadcast %90 : vector<1x256xf32> to vector<32x256xf32>
    %92 = arith.mulf %89, %91 : vector<32x256xf32>
    %93 = vector.extract_strided_slice %36 {offsets = [0, 7], sizes = [32, 1], strides = [1, 1]} : vector<32x9xf32> to vector<32x1xf32>
    %94 = vector.broadcast %93 : vector<32x1xf32> to vector<32x256xf32>
    %95 = arith.mulf %92, %94 : vector<32x256xf32>
    %96 = arith.addf %88, %95 : vector<32x256xf32>
    %c239_i32 = arith.constant 239 : i32
    %97 = tpu.dynamic_rotate %35 by %c239_i32 dim 1 : vector<32x256xf32>, i32 -> vector<32x256xf32>
    %98 = vector.extract_strided_slice %37 {offsets = [8, 0], sizes = [1, 256], strides = [1, 1]} : vector<9x256xf32> to vector<1x256xf32>
    %99 = vector.broadcast %98 : vector<1x256xf32> to vector<32x256xf32>
    %100 = arith.mulf %97, %99 : vector<32x256xf32>
    %101 = vector.extract_strided_slice %36 {offsets = [0, 8], sizes = [32, 1], strides = [1, 1]} : vector<32x9xf32> to vector<32x1xf32>
    %102 = vector.broadcast %101 : vector<32x1xf32> to vector<32x256xf32>
    %103 = arith.mulf %100, %102 : vector<32x256xf32>
    %104 = arith.addf %96, %103 : vector<32x256xf32>
    %c0_11 = arith.constant 0 : index
    %c0_12 = arith.constant 0 : index
    %105 = vector.load %arg6[%c0_11, %c0_12] : memref<32x1xf32, #tpu.memory_space<vmem>>, vector<32x1xf32>
    %106 = vector.broadcast %105 : vector<32x1xf32> to vector<32x256xf32>
    %107 = arith.addf %104, %106 : vector<32x256xf32>
    %cst_13 = arith.constant 5.000000e-01 : f32
    %108 = vector.broadcast %cst_13 : f32 to vector<32x256xf32>
    %109 = arith.mulf %108, %107 : vector<32x256xf32>
    %cst_14 = arith.constant 0.707106769 : f32
    %110 = vector.broadcast %cst_14 : f32 to vector<32x256xf32>
    %111 = arith.mulf %107, %110 : vector<32x256xf32>
    %112 = math.erf %111 : vector<32x256xf32>
    %cst_15 = arith.constant 1.000000e+00 : f32
    %113 = vector.broadcast %cst_15 : f32 to vector<32x256xf32>
    %114 = arith.addf %113, %112 : vector<32x256xf32>
    %115 = arith.mulf %109, %114 : vector<32x256xf32>
    %c0_16 = arith.constant 0 : index
    %c0_17 = arith.constant 0 : index
    %116 = vector.load %arg7[%c0_16, %c0_17] : memref<4x32xf32, #tpu.memory_space<vmem>>, vector<4x32xf32>
    %cst_18 = arith.constant dense<0.000000e+00> : vector<4x256xf32>
    %117 = tpu.matmul %116, %115, %cst_18 {dimension_numbers = #tpu.dot_dimension_numbers<[1], [0], [0], [1], [0, 0, 1, 1], [], []>} : vector<4x32xf32>, vector<32x256xf32>, vector<4x256xf32> -> vector<4x256xf32>
    %c0_19 = arith.constant 0 : index
    %c0_20 = arith.constant 0 : index
    %118 = vector.load %arg8[%c0_19, %c0_20] : memref<4x1xf32, #tpu.memory_space<vmem>>, vector<4x1xf32>
    %119 = vector.broadcast %118 : vector<4x1xf32> to vector<4x256xf32>
    %120 = arith.addf %117, %119 : vector<4x256xf32>
    %c0_21 = arith.constant 0 : index
    %c0_22 = arith.constant 0 : index
    %121 = vector.load %arg9[%c0_21, %c0_22] : memref<4x256xf32, #tpu.memory_space<vmem>>, vector<4x256xf32>
    tpu.vector_store %arg9[%c0_21, %c0_22], %120 {strides = array<i32>} : memref<4x256xf32, #tpu.memory_space<vmem>>, vector<4x256xf32>,
    return
  }
  func.func @transform_0(%arg0: i32) -> (i32, i32) {
    %c0_i32 = arith.constant 0 : i32
    %c0_i32_0 = arith.constant 0 : i32
    return %c0_i32, %arg0 : i32, i32
  }
  func.func @transform_1(%arg0: i32) -> (i32, i32) {
    %c0_i32 = arith.constant 0 : i32
    %c0_i32_0 = arith.constant 0 : i32
    %c0_i32_1 = arith.constant 0 : i32
    return %c0_i32, %c0_i32_0 : i32, i32
  }
  func.func @transform_2(%arg0: i32) -> (i32, i32) {
    %c0_i32 = arith.constant 0 : i32
    %c0_i32_0 = arith.constant 0 : i32
    %c0_i32_1 = arith.constant 0 : i32
    return %c0_i32, %c0_i32_0 : i32, i32
  }
  func.func @transform_3(%arg0: i32) -> (i32, i32) {
    %c0_i32 = arith.constant 0 : i32
    %c0_i32_0 = arith.constant 0 : i32
    %c0_i32_1 = arith.constant 0 : i32
    return %c0_i32, %c0_i32_0 : i32, i32
  }
  func.func @transform_4(%arg0: i32) -> (i32, i32) {
    %c0_i32 = arith.constant 0 : i32
    %c0_i32_0 = arith.constant 0 : i32
    %c0_i32_1 = arith.constant 0 : i32
    return %c0_i32, %c0_i32_0 : i32, i32
  }
  func.func @transform_5(%arg0: i32) -> (i32, i32) {
    %c0_i32 = arith.constant 0 : i32
    %c0_i32_0 = arith.constant 0 : i32
    %c0_i32_1 = arith.constant 0 : i32
    return %c0_i32, %c0_i32_0 : i32, i32
  }
  func.func @transform_6(%arg0: i32) -> (i32, i32) {
    %c0_i32 = arith.constant 0 : i32
    %c0_i32_0 = arith.constant 0 : i32
    %c0_i32_1 = arith.constant 0 : i32
    return %c0_i32, %c0_i32_0 : i32, i32
  }
  func.func @transform_7(%arg0: i32) -> (i32, i32) {
    %c0_i32 = arith.constant 0 : i32
    %c0_i32_0 = arith.constant 0 : i32
    %c0_i32_1 = arith.constant 0 : i32
    return %c0_i32, %c0_i32_0 : i32, i32
  }
  func.func @transform_8(%arg0: i32) -> (i32, i32) {
    %c0_i32 = arith.constant 0 : i32
    %c0_i32_0 = arith.constant 0 : i32
    return %c0_i32, %arg0 : i32, i32
  }
}

</mosaic_0001>

<bundles_post_ra>
// kernel: tpu_custom_call.1
= control target key start
LH: loop header
LB: loop body
LE: loop exit
PB: predicated region body
PF: predicated region fallthrough
CT: control target
= control target key end

     0   :  { %13 = vsyncpa [#allocation3], 0  ;;  %s3601_s0 = inlined_call_operand.vmem [shape: f32[4,512], index: 0, kind: input, shape index: {}]   ;;  %s3602_s1 = inlined_call_operand.vmem [shape: f32[9,256], index: 1, kind: input, shape index: {}]   ;;  %s3603_s2 = inlined_call_operand.vmem [shape: f32[32,4], index: 2, kind: input, shape index: {}]   ;;  %s3604_s3 = inlined_call_operand.vmem [shape: f32[32,1], index: 3, kind: input, shape index: {}]   ;;  %s3605_s4 = inlined_call_operand.vmem [shape: f32[32,9], index: 4, kind: input, shape index: {}]   ;;  %s3606_s5 = inlined_call_operand.vmem [shape: f32[32,1], index: 5, kind: input, shape index: {}]   ;;  %s3607_s6 = inlined_call_operand.vmem [shape: f32[4,32], index: 6, kind: input, shape index: {}]   ;;  %s3608_s7 = inlined_call_operand.vmem [shape: f32[4,1], index: 7, kind: input, shape index: {}]   ;;  %s3609_s8 = inlined_call_operand.hbm [shape: f32[4,512], index: 8, kind: output, shape index: {}]  }
   0x1   :  { %15 = vsyncpa [#allocation3 + $0x1], 0  ;;  %s2228_s27 = smov 0   ;;  %s2230_s28 = smov 0  }
   0x2   :  { %s2232_s29 = smov 0   ;;  %s2234_s30 = smov 0  }
   0x3 LB: > { %s2249_s9 = sadd.s32 4294967295, %s2164_s30   ;;  %s1937_s10 = sadd.s32 4294967294, %s2164_s30   ;;  %s2164_s30 = sphi %s2234_s30, %s3623_s30   ;;  %s2160_s29 = sphi %s2232_s29, %s3622_s29   ;;  %s2156_s28 = sphi %s2230_s28, %s3621_s28   ;;  %s2152_s27 = sphi %s2228_s27, %s3620_s27  }
   0x4   : > { %s2253_s11 = sadd.s32 1, %s2164_s30   ;;  %s201_s12 = sadd.s32 1, %s2160_s29 }
   0x5   : > { %s198_s13 = ssub.s32 %s2164_s30, %s2253_s11  ;;  %p211_p0 = scmp.ne.s32.totalorder %s2160_s29, %s2156_s28 }
   0x6   : > { %p199_p1 = scmp.eq.s32.totalorder %s198_s13, 0  ;;  %p212_p2 = scmp.eq.s32.totalorder %s2249_s9, 1 }
   0x7   : > { %p217_p3 = scmp.ne.s32.totalorder %s2156_s28, %s2152_s27  ;;  %p218_p4 = scmp.eq.s32.totalorder %s1937_s10, 1 }
   0x8   : > { %s2264_s14 = scalar_select %p199_p1, %s2160_s29, %s201_s12  }
   0x9   : > { %p2266_p5 = por %p212_p2, %p211_p0  ;;  %p2270_p6 = por %p218_p4, %p217_p3 }
   0xa   : > { %p1940_p7 = scmp.ge.s32.totalorder %s2164_s30, 1  ;;  %p266_p8 = scmp.lt.s32.totalorder %s2164_s30, 3 }
   0xc   : > { %p267_p9 = pnand %p1940_p7, %p266_p8 }
   0xd   : > { %s1942_s26 = sshll.u32 (!%p267_p9), %s2249_s9, 1  ;;  %s2171_s20 = smov (!%p267_p9), 17  }
   0xe   : > { %270 = sbr.rel (%p267_p9) target bundleno = 839 (0x347), region = 52  ;;  %p301_p10 = scmp.lt.s32.totalorder (!%p267_p9), %s1942_s26, 3 }
   0xf   : > { %s2172_s21 = smov (!%p267_p9), 16   ;;  %s2173_s22 = smov (!%p267_p9), 15  }
  0x10   : > { %s2174_s23 = smov (!%p267_p9), 1   ;;  %s2179_s24 = smov (!%p267_p9), 111  }
  0x11   : > { %s297_s17 = sand.u32 (!%p267_p9), 1, %s2156_s28  }
  0x12   : > { %s1941_s18 = sshll.u32 (!%p267_p9), %s297_s17, 3 }
  0x13   : > { %v2279_v0 = vld [vmem:[%s3605_s4 + $0x8] sm:$0xff]  ;;  %v310_v1 = vld [vmem:[%s3603_s2 + $0x10] sm:$0xff]  ;;  %v2166_v2 = vmov 4   ;;  %v2167_v3 = vmov 0   ;;  %v308_v4 = vld [vmem:[%s3603_s2] sm:$0xff]  ;;  %v2168_v5 = vmov 1  }
  0x14   : > { %2034 = vset.pattern.permute.xlu0 %v2166_v2  ;;  %2024 = vset.pattern.permute.xlu1 %v2167_v3  ;;  %v311_v6 = vld [vmem:[%s3603_s2 + $0x18] sm:$0xff]  ;;  %v309_v7 = vld [vmem:[%s3603_s2 + $0x8] sm:$0xff]  ;;  %v2169_v8 = vmov 2   ;;  %v461_v9 = vld [vmem:[%s3604_s3] sm:$0xff]  ;;  %v2170_v11 = vmov 3   ;;  %s3625_s26 = smov (!%p301_p10, %s1942_s26), 3 }
  0x15   : > { %860 = vperm.xlu0 %2034, %v2279_v0   ;;  %324 = vperm.xlu1 %2024, %v310_v1   ;;  %v2306_v10 = vld [vmem:[%s3605_s4] sm:$0xff]  ;;  %v847_v12 = vld [vmem:[%s3605_s4 + $0x10] sm:$0xff]  ;;  %v462_v13 = vld [vmem:[%s3604_s3 + $0x8] sm:$0xff]  ;;  %s1943_s13 = sshll.u32 %s3625_s26, 2  ;;  %s2175_s26 = smov 127  }
  0x16   : > { %2025 = vset.pattern.permute.xlu2 %v2168_v5  ;;  %v463_v14 = vld [vmem:[%s3604_s3 + $0x10] sm:$0xff]  ;;  %v464_v15 = vld [vmem:[%s3604_s3 + $0x18] sm:$0xff]  ;;  %s304_s19 = scalar_lea.vmem %s3601_s0, %s1943_s13 }
  0x17   : > { %348 = vperm.xlu2 %2025, %v308_v4   ;;  %v848_v17 = vld [vmem:[%s3605_s4 + $0x18] sm:$0xff]  ;;  %v307_v22 = vld [vmem:[%s304_s19] sm:$0xff]  ;;  %s1967_s19 = sshll.u32 %s2249_s9, 3  ;;  %s1862_s9 = scalar_lea.sflag [#allocation3], %s297_s17 }
  0x18   : > { %v363_v25 = vperm.slane %v307_v22, 1  ;;  %v364_v26 = vperm.slane %v307_v22, 5  ;;  %v333_v27 = vperm.slane %v307_v22, 0  ;;  %v334_v28 = vperm.slane %v307_v22, 4 }
  0x19   : > { %v401_v42 = vperm.slane %v307_v22, 2  ;;  %v402_v43 = vperm.slane %v307_v22, 6  ;;  %v439_v53 = vperm.slane %v307_v22, 3  ;;  %v440_v54 = vperm.slane %v307_v22, 7 }
  0x1a   : > { %v2350_v29 = vperm.slane %v363_v25, 1  ;;  %v2352_v30 = vperm.slane %v364_v26, 1  ;;  %v2354_v31 = vperm.slane %v333_v27, 0  ;;  %v2356_v32 = vperm.slane %v334_v28, 0 }
  0x1b   : > { %v2373_v46 = vperm.slane %v401_v42, 2  ;;  %v2375_v47 = vperm.slane %v402_v43, 2  ;;  %v2388_v60 = vperm.slane %v439_v53, 3  ;;  %v2390_v61 = vperm.slane %v440_v54, 3 }
  0x1d   : > { %2035 = vset.pattern.permute.xlu0 %v2167_v3  ;;  %329 = vperm.xlu1 %2024, %v311_v6  }
  0x1e   : > { %314 = vperm.xlu0 %2035, %v308_v4  }
  0x1f   : > { %352 = vperm.xlu2 %2025, %v309_v7  }
  0x25   : > { %2026 = vset.pattern.permute.xlu1 %v2168_v5 }
  0x26   : > { %360 = vperm.xlu1 %2026, %v311_v6   ;;  %319 = vperm.xlu0 %2035, %v309_v7  }
  0x27   : > { %2027 = vset.pattern.permute.xlu2 %v2169_v8 }
  0x28   : > { %386 = vperm.xlu2 %2027, %v308_v4  }
  0x2e   : > { %2028 = vset.pattern.permute.xlu1 %v2169_v8  ;;  %467 = vperm.xlu0 %2035, %v461_v9  }
  0x2f   : > { %390 = vperm.xlu1 %2028, %v309_v7  }
  0x30   : > { %394 = vperm.xlu2 %2027, %v310_v1  }
  0x36   : > { %919 = vperm.xlu0 %2035, %v2306_v10  }
  0x37   : > { %2029 = vset.pattern.permute.xlu1 %v2170_v11 }
  0x38   : > { %424 = vperm.xlu1 %2029, %v308_v4   ;;  %2030 = vset.pattern.permute.xlu2 %v2170_v11 }
  0x39   : > { %428 = vperm.xlu2 %2030, %v309_v7  }
  0x3e   : > { %2037 = vset.pattern.permute.xlu0 %v2168_v5 }
  0x3f   : > { %356 = vperm.xlu0 %2037, %v310_v1  }
  0x40   : > { %432 = vperm.xlu1 %2029, %v310_v1  }
  0x41   : > { %436 = vperm.xlu2 %2030, %v311_v6  }
  0x47   : > { %994 = vperm.xlu0 %2037, %v847_v12  }
  0x48   : > { %2031 = vset.pattern.permute.xlu1 %v2167_v3 }
  0x49   : > { %472 = vperm.xlu1 %2031, %v462_v13   ;;  %2032 = vset.pattern.permute.xlu2 %v2167_v3 }
  0x4a   : > { %477 = vperm.xlu2 %2032, %v463_v14  }
  0x4f   : > { %2042 = vset.pattern.permute.xlu0 %v2169_v8 }
  0x50   : > { %398 = vperm.xlu0 %2042, %v311_v6  }
  0x51   : > { %482 = vperm.xlu1 %2031, %v464_v15  }
  0x52   : > { %2033 = vset.pattern.permute.xlu2 %v2166_v2 }
  0x53   : > { %855 = vperm.xlu2 %2033, %v2306_v10  }
  0x58   : > { %1057 = vperm.xlu0 %2042, %v2279_v0  }
  0x59   : > { %2036 = vset.pattern.permute.xlu1 %v2166_v2 }
  0x5a   : > { %865 = vperm.xlu1 %2036, %v847_v12  }
  0x5b   : > { %870 = vperm.xlu2 %2033, %v848_v17  }
  0x60   : > { %2045 = vset.pattern.permute.xlu0 %v2170_v11 }
  0x62   : > { %2038 = vset.pattern.permute.xlu1 %v2167_v3 }
  0x63   : > { %923 = vperm.xlu1 %2038, %v2279_v0   ;;  %2039 = vset.pattern.permute.xlu2 %v2167_v3 }
  0x64   : > { %927 = vperm.xlu2 %2039, %v847_v12  }
  0x6b   : > { %931 = vperm.xlu1 %2038, %v848_v17  }
  0x6c   : > { %2041 = vset.pattern.permute.xlu2 %v2168_v5 }
  0x6d   : > { %990 = vperm.xlu2 %2041, %v2279_v0  }
  0x71   : > { %v349_v16 = vpop.permute.xlu2 %348 }
  0x72   : > { %v369_v48 = vmul.f32 %v2350_v29, %v349_v16  ;;  %v370_v49 = vmul.f32 %v2352_v30, %v349_v16 }
  0x73   : > { %2040 = vset.pattern.permute.xlu1 %v2168_v5 }
  0x74   : > { %986 = vperm.xlu1 %2040, %v2306_v10  }
  0x75   : > { %2043 = vset.pattern.permute.xlu2 %v2169_v8 }
  0x76   : > { %1053 = vperm.xlu2 %2043, %v2306_v10  }
  0x79   : > { %v2336_v18 = vpop.permute.xlu2 %352 }
  0x7c   : > { %998 = vperm.xlu1 %2040, %v848_v17  }
  0x7e   : > { %1065 = vperm.xlu2 %2043, %v848_v17  }
  0x82   : > { %v387_v24 = vpop.permute.xlu2 %386 }
  0x83   : > { %v407_v57 = vmul.f32 %v2373_v46, %v387_v24  ;;  %v408_v58 = vmul.f32 %v2375_v47, %v387_v24 }
  0x84   : > { %2044 = vset.pattern.permute.xlu1 %v2169_v8 }
  0x85   : > { %1061 = vperm.xlu1 %2044, %v847_v12  }
  0x86   : > { %2048 = vset.pattern.permute.xlu2 %v2170_v11 }
  0x87   : > { %v2338_v19 = vpop.permute.xlu0 %860  ;;  %v2340_v20 = vpop.permute.xlu1 %324 }
  0x88   : > { %v343_v13 = vmul.f32 %v2354_v31, %v2340_v20  ;;  %v344_v14 = vmul.f32 %v2356_v32, %v2340_v20  ;;  %v371_v20 = vmul.f32 %v2350_v29, %v2336_v18 }
  0x8a   : > { %v395_v41 = vpop.permute.xlu2 %394 }
  0x8b   : > { %v411_v22 = vmul.f32 %v2373_v46, %v395_v41 }
  0x8d   : > { %2046 = vset.pattern.permute.xlu1 %v2170_v11 }
  0x8f   : > { %v330_v21 = vpop.permute.xlu1 %329 }
  0x90   : > { %v315_v23 = vpop.permute.xlu0 %314  ;;  %v345_v35 = vmul.f32 %v2354_v31, %v330_v21  ;;  %v346_v36 = vmul.f32 %v2356_v32, %v330_v21 }
  0x91   : > { %v339_v50 = vmul.f32 %v2354_v31, %v315_v23  ;;  %v340_v51 = vmul.f32 %v2356_v32, %v315_v23  ;;  %v412_v23 = vmul.f32 %v2375_v47, %v395_v41 }
  0x93   : > { %v2381_v52 = vpop.permute.xlu2 %428  ;;  %v377_v55 = vadd.f32 %v369_v48, %v339_v50  ;;  %v378_v56 = vadd.f32 %v370_v49, %v340_v51 }
  0x95   : > { %v415_v63 = vadd.f32 %v407_v57, %v377_v55  ;;  %v416_v0 = vadd.f32 %v408_v58, %v378_v56  ;;  %v447_v57 = vmul.f32 %v2388_v60, %v2381_v52 }
  0x98   : > { %v361_v33 = vpop.permute.xlu1 %360  ;;  %v2358_v34 = vpop.permute.xlu0 %319 }
  0x99   : > { %v375_v37 = vmul.f32 %v2350_v29, %v361_v33  ;;  %v376_v38 = vmul.f32 %v2352_v30, %v361_v33  ;;  %v341_v28 = vmul.f32 %v2354_v31, %v2358_v34 }
  0x9b   : > { %v2364_v39 = vadd.f32 %v375_v37, %v345_v35  ;;  %v2366_v40 = vadd.f32 %v376_v38, %v346_v36  ;;  %v2394_v6 = vpop.permute.xlu2 %436  ;;  %v379_v50 = vadd.f32 %v371_v20, %v341_v28 }
  0xa0   : > { %v468_v44 = vpop.permute.xlu0 %467 }
  0xa1   : > { %v2371_v45 = vpop.permute.xlu1 %390 }
  0xa4   : > { %v478_v42 = vpop.permute.xlu2 %477 }
  0xa8   : > { %v2386_v59 = vpop.permute.xlu0 %919 }
  0xaa   : > { %v425_v62 = vpop.permute.xlu1 %424 }
  0xab   : > { %v445_v1 = vmul.f32 %v2388_v60, %v425_v62  ;;  %v446_v2 = vmul.f32 %v2390_v61, %v425_v62 }
  0xad   : > { %v453_v4 = vadd.f32 %v445_v1, %v415_v63  ;;  %v454_v5 = vadd.f32 %v446_v2, %v416_v0 }
  0xaf   : > { %v2397_v7 = vadd.f32 %v468_v44, %v453_v4  ;;  %v2399_v8 = vadd.f32 %v468_v44, %v454_v5 }
  0xb1   : > { %v2402_v9 = vmul.f32 0.70710677, %v2397_v7  ;;  %v2405_v10 = vmul.f32 0.70710677, %v2399_v8  ;;  %v357_v12 = vpop.permute.xlu0 %356 }
  0xb2   : > { %v373_v15 = vmul.f32 %v2350_v29, %v357_v12  ;;  %v374_v11 = vmul.f32 %v2352_v30, %v357_v12  ;;  %v433_v21 = vpop.permute.xlu1 %432  ;;  %v409_v29 = vmul.f32 %v2373_v46, %v2371_v45 }
  0xb3   : > { %v509_v16 = vmul.f32 %v2402_v9, %v2402_v9  ;;  %v549_v17 = vmul.f32 %v2405_v10, %v2405_v10  ;;  %v449_v33 = vmul.f32 %v2388_v60, %v433_v21  ;;  %v450_v41 = vmul.f32 %v2390_v61, %v433_v21 }
  0xb4   : > { %v381_v24 = vadd.f32 %v373_v15, %v343_v13  ;;  %v382_v25 = vadd.f32 %v374_v11, %v344_v14  ;;  %v417_v56 = vadd.f32 %v409_v29, %v379_v50 }
  0xb5   : > { %v2421_v26 = vmin.f32 %v509_v16, 16.0  ;;  %v2423_v27 = vmin.f32 %v549_v17, 16.0 }
  0xb6   : > { %v419_v35 = vadd.f32 %v411_v22, %v381_v24  ;;  %v420_v36 = vadd.f32 %v412_v23, %v382_v25  ;;  %v455_v16 = vadd.f32 %v447_v57, %v417_v56 }
  0xb7   : > { %v511_v37 = vmul.f32 2.1237322e-06, %v2421_v26  ;;  %v522_v38 = vmul.f32 3.8918573e-05, %v2421_v26  ;;  %v562_v43 = vmul.f32 3.8918573e-05, %v2423_v27 }
  0xb8   : > { %v457_v44 = vadd.f32 %v449_v33, %v419_v35  ;;  %v458_v31 = vadd.f32 %v450_v41, %v420_v36  ;;  %v551_v13 = vmul.f32 2.1237322e-06, %v2423_v27 }
  0xb9   : > { %v512_v48 = vadd.f32 0.00028619796, %v511_v37  ;;  %v523_v49 = vadd.f32 0.001143296, %v522_v38  ;;  %v563_v51 = vadd.f32 0.001143296, %v562_v43 }
  0xba   : > { %v2434_v53 = vadd.f32 %v478_v42, %v457_v44  ;;  %v2444_v1 = vadd.f32 %v478_v42, %v458_v31  ;;  %v552_v33 = vadd.f32 0.00028619796, %v551_v13  ;;  %v372_v42 = vmul.f32 %v2352_v30, %v2336_v18 }
  0xbb   : > { %v513_v54 = vmul.f32 %v512_v48, %v2421_v26  ;;  %v524_v55 = vmul.f32 %v523_v49, %v2421_v26  ;;  %v564_v58 = vmul.f32 %v563_v51, %v2423_v27  ;;  %v473_v14 = vpop.permute.xlu1 %472  ;;  %v342_v48 = vmul.f32 %v2356_v32, %v2358_v34 }
  0xbc   : > { %v2442_v62 = vmul.f32 0.70710677, %v2434_v53  ;;  %v2455_v21 = vmul.f32 0.70710677, %v2444_v1  ;;  %v2459_v25 = vadd.f32 %v473_v14, %v455_v16  ;;  %v553_v50 = vmul.f32 %v552_v33, %v2423_v27 }
  0xbd   : > { %v514_v63 = vadd.f32 0.0036580483, %v513_v54  ;;  %v525_v0 = vadd.f32 0.014752088, %v524_v55  ;;  %v565_v2 = vadd.f32 0.014752088, %v564_v58  ;;  %v410_v18 = vmul.f32 %v2375_v47, %v2371_v45 }
  0xbe   : > { %v669_v4 = vmul.f32 %v2442_v62, %v2442_v62  ;;  %v709_v41 = vmul.f32 %v2455_v21, %v2455_v21  ;;  %v2470_v44 = vmul.f32 0.70710677, %v2459_v25  ;;  %v380_v34 = vadd.f32 %v372_v42, %v342_v48 }
  0xbf   : > { %v515_v5 = vmul.f32 %v514_v63, %v2421_v26  ;;  %v526_v12 = vmul.f32 %v525_v0, %v2421_v26  ;;  %v566_v15 = vmul.f32 %v565_v2, %v2423_v27  ;;  %v554_v63 = vadd.f32 0.0036580483, %v553_v50 }
  0xc0   : > { %v2452_v11 = vmin.f32 %v669_v4, 16.0  ;;  %v2479_v56 = vmin.f32 %v709_v41, 16.0  ;;  %v589_v32 = vmul.f32 %v2470_v44, %v2470_v44  ;;  %v418_v2 = vadd.f32 %v410_v18, %v380_v34 }
  0xc1   : > { %v527_v17 = vadd.f32 0.112945676, %v526_v12  ;;  %v567_v22 = vadd.f32 0.112945676, %v566_v15  ;;  %v516_v20 = vadd.f32 0.05243302, %v515_v5  ;;  %v448_v4 = vmul.f32 %v2390_v61, %v2381_v52  ;;  %v2497_v52 = vpop.permute.xlu0 %994 }
  0xc2   : > { %v671_v23 = vmul.f32 2.1237322e-06, %v2452_v11  ;;  %v682_v24 = vmul.f32 3.8918573e-05, %v2452_v11  ;;  %v722_v5 = vmul.f32 3.8918573e-05, %v2479_v56  ;;  %v555_v16 = vmul.f32 %v554_v63, %v2423_v27 }
  0xc3   : > { %v528_v28 = vmul.f32 %v527_v17, %v2421_v26  ;;  %v568_v38 = vmul.f32 %v567_v22, %v2423_v27  ;;  %v517_v49 = vmul.f32 %v516_v20, %v2421_v26  ;;  %v2489_v13 = vmin.f32 %v589_v32, 16.0 }
  0xc4   : > { %v672_v35 = vadd.f32 0.00028619796, %v671_v23  ;;  %v683_v36 = vadd.f32 0.001143296, %v682_v24  ;;  %v456_v33 = vadd.f32 %v448_v4, %v418_v2 }
  0xc5   : > { %v529_v37 = vadd.f32 0.4994258, %v528_v28  ;;  %v569_v55 = vadd.f32 0.4994258, %v568_v38  ;;  %v518_v58 = vadd.f32 0.18741608, %v517_v49 }
  0xc6   : > { %v673_v29 = vmul.f32 %v672_v35, %v2452_v11  ;;  %v684_v43 = vmul.f32 %v683_v36, %v2452_v11  ;;  %v591_v23 = vmul.f32 2.1237322e-06, %v2489_v13  ;;  %v723_v28 = vadd.f32 0.001143296, %v722_v5 }
  0xc7   : > { %v530_v31 = vmul.f32 %v529_v37, %v2421_v26  ;;  %v570_v45 = vmul.f32 %v569_v55, %v2423_v27  ;;  %v519_v15 = vmul.f32 %v518_v58, %v2421_v26  ;;  %v602_v35 = vmul.f32 3.8918573e-05, %v2489_v13 }
  0xc8   : > { %v674_v51 = vadd.f32 0.0036580483, %v673_v29  ;;  %v685_v54 = vadd.f32 0.014752088, %v684_v43  ;;  %v556_v26 = vadd.f32 0.05243302, %v555_v16  ;;  %v2500_v41 = vadd.f32 %v473_v14, %v456_v33 }
  0xc9   : > { %v531_v30 = vadd.f32 1.0, %v530_v31  ;;  %v2495_v20 = vadd.f32 1.0, %v570_v45  ;;  %v520_v38 = vadd.f32 1.1283791, %v519_v15  ;;  %v592_v48 = vadd.f32 0.00028619796, %v591_v23  ;;  %v399_v15 = vpop.permute.xlu0 %398 }
  0xca   : > { %v686_v57 = vmul.f32 %v685_v54, %v2452_v11  ;;  %v675_v0 = vmul.f32 %v674_v51, %v2452_v11  ;;  %v724_v31 = vmul.f32 %v723_v28, %v2479_v56  ;;  %v603_v50 = vadd.f32 0.001143296, %v602_v35 }
  0xcb   : > { %2066 = vrcp.f32 %v531_v30  ;;  %v543_v49 = vand.u32 2147483648, %v531_v30  ;;  %v541_v54 = vand.u32 2147483647, %v531_v30  ;;  %v593_v14 = vmul.f32 %v592_v48, %v2489_v13 }
  0xcc   : > { %v687_v12 = vadd.f32 0.112945676, %v686_v57  ;;  %v676_v17 = vadd.f32 0.05243302, %v675_v0  ;;  %2068 = vrcp.f32 %v2495_v20  ;;  %v604_v55 = vmul.f32 %v603_v50, %v2489_v13 }
  0xcd   : > { %vm537_vm1 = vweird.f32 %v531_v30  ;;  %v544_v34 = vor.u32 1.1754944e-38, %v543_v49  ;;  %v557_v58 = vmul.f32 %v556_v26, %v2423_v27  ;;  %v725_v63 = vadd.f32 0.014752088, %v724_v31 }
  0xce   : > { %v688_v22 = vmul.f32 %v687_v12, %v2452_v11  ;;  %v677_v29 = vmul.f32 %v676_v17, %v2452_v11  ;;  %v2513_v0 = vmul.f32 0.70710677, %v2500_v41  ;;  %v521_v2 = vmul.f32 %v520_v38, %v2402_v9 }
  0xcf   : > { %vm542_vm3 = vcmp.eq.f32.partialorder %v541_v54, 8.507059e+37  ;;  %v605_v45 = vadd.f32 0.014752088, %v604_v55  ;;  %v451_v17 = vmul.f32 %v2388_v60, %v2394_v6  ;;  %v558_v28 = vadd.f32 0.18741608, %v557_v58 }
  0xd0   : > { %v689_v37 = vadd.f32 0.4994258, %v688_v22  ;;  %v678_v32 = vadd.f32 0.18741608, %v677_v29  ;;  %v452_v22 = vmul.f32 %v2390_v61, %v2394_v6  ;;  %v726_v9 = vmul.f32 %v725_v63, %v2479_v56 }
  0xd1   : > { %v2067_v24 = vpop.eup %2066  ;;  %v629_v33 = vmul.f32 %v2513_v0, %v2513_v0  ;;  %v413_v38 = vmul.f32 %v2373_v46, %v399_v15  ;;  %v711_v6 = vmul.f32 2.1237322e-06, %v2479_v56  ;;  %v414_v48 = vmul.f32 %v2375_v47, %v399_v15 }
  0xd2   : > { %v533_v36 = vmul.f32 %v2067_v24, %v531_v30  ;;  %v690_v43 = vmul.f32 %v689_v37, %v2452_v11  ;;  %vm538_vm0 = vweird.f32 %v2067_v24  ;;  %v2516_v5 = vpop.eup %2068  ;;  %v594_v30 = vadd.f32 0.0036580483, %v593_v14 }
  0xd3   : > { %vm539_vm2 = vmor %vm537_vm1, %vm538_vm0  ;;  %v679_v23 = vmul.f32 %v678_v32, %v2452_v11  ;;  %v573_v60 = vmul.f32 %v2516_v5, %v2495_v20  ;;  %v727_v31 = vadd.f32 0.112945676, %v726_v9  ;;  %v421_v14 = vadd.f32 %v413_v38, %v2364_v39 }
  0xd4   : > { %v534_v42 = vsub.f32 1.0, %v533_v36  ;;  %v2506_v18 = vadd.f32 1.0, %v690_v43  ;;  %v493_v36 = vmul.f32 0.5, %v2397_v7  ;;  %v595_v11 = vmul.f32 %v594_v30, %v2489_v13 }
  0xd5   : > { %v680_v29 = vadd.f32 1.1283791, %v679_v23  ;;  %v2534_v43 = vmin.f32 %v629_v33, 16.0  ;;  %v559_v7 = vmul.f32 %v558_v28, %v2423_v27  ;;  %v574_v46 = vsub.f32 1.0, %v573_v60 }
  0xd6   : > { %v535_v51 = vmul.f32 %v2067_v24, %v534_v42  ;;  %2070 = vrcp.f32 %v2506_v18  ;;  %v703_v54 = vand.u32 2147483648, %v2506_v18  ;;  %v596_v32 = vadd.f32 0.05243302, %v595_v11 }
  0xd7   : > { %v681_v47 = vmul.f32 %v680_v29, %v2442_v62  ;;  %v631_v27 = vmul.f32 2.1237322e-06, %v2534_v43  ;;  %v422_v58 = vadd.f32 %v414_v48, %v2366_v40  ;;  %vm697_vm5 = vweird.f32 %v2506_v18 }
  0xd8   : > { %v536_v57 = vadd.f32 %v2067_v24, %v535_v51  ;;  %v728_v39 = vmul.f32 %v727_v31, %v2479_v56  ;;  %v597_v40 = vmul.f32 %v596_v32, %v2489_v13  ;;  %v497_v9 = vmul.f32 0.5, %v2434_v53 }
  0xd9   : > { %v460_v28 = vadd.f32 %v452_v22, %v422_v58  ;;  %vm578_vm8 = vweird.f32 %v2516_v5  ;;  %v581_v22 = vand.u32 2147483647, %v2495_v20  ;;  %v583_v53 = vand.u32 2147483648, %v2495_v20 }
  0xda   : > { %v540_v4 = vsel %vm539_vm2, %v2067_v24, %v536_v57  ;;  %v606_v24 = vmul.f32 %v605_v45, %v2489_v13  ;;  %v701_v57 = vand.u32 2147483647, %v2506_v18  ;;  %v632_v45 = vadd.f32 0.00028619796, %v631_v27 }
  0xdb   : > { %v545_v12 = vsel %vm542_vm3, %v544_v34, %v540_v4  ;;  %v704_v4 = vor.u32 1.1754944e-38, %v703_v54  ;;  %v729_v60 = vadd.f32 0.4994258, %v728_v39  ;;  %vm577_vm9 = vweird.f32 %v2495_v20 }
  0xdc   : > { %v546_v16 = vmul.f32 %v545_v12, %v521_v2  ;;  %v2071_v35 = vpop.eup %2070  ;;  %v607_v26 = vadd.f32 0.112945676, %v606_v24  ;;  %v642_v2 = vmul.f32 3.8918573e-05, %v2534_v43  ;;  %v459_v12 = vadd.f32 %v451_v17, %v421_v14  ;;  %vm2585_vm10 = vmor %vm577_vm9, %vm578_vm8 }
  0xdd   : > { %v693_v61 = vmul.f32 %v2071_v35, %v2506_v18  ;;  %vm698_vm4 = vweird.f32 %v2071_v35  ;;  %vm702_vm7 = vcmp.eq.f32.partialorder %v701_v57, 8.507059e+37  ;;  %v575_v18 = vmul.f32 %v2516_v5, %v574_v46 }
  0xde   : > { %v1944_v37 = vclamps-f32 %v546_v16, 1.0  ;;  %v608_v50 = vmul.f32 %v607_v26, %v2489_v13  ;;  %vm699_vm6 = vmor %vm697_vm5, %vm698_vm4  ;;  %v643_v15 = vadd.f32 0.001143296, %v642_v2  ;;  %v633_v33 = vmul.f32 %v632_v45, %v2534_v43 }
  0xdf   : > { %v694_v49 = vsub.f32 1.0, %v693_v61  ;;  %v598_v61 = vadd.f32 0.18741608, %v597_v40  ;;  %vm2589_vm11 = vcmp.eq.f32.partialorder %v581_v22, 8.507059e+37 }
  0xe0   : > { %v829_v42 = vadd.f32 1.0, %v1944_v37  ;;  %v609_v34 = vadd.f32 0.4994258, %v608_v50  ;;  %v712_v37 = vadd.f32 0.00028619796, %v711_v6  ;;  %v644_v11 = vmul.f32 %v643_v15, %v2534_v43 }
  0xe1   : > { %v695_v55 = vmul.f32 %v2071_v35, %v694_v49  ;;  %v576_v6 = vadd.f32 %v2516_v5, %v575_v18  ;;  %v634_v29 = vadd.f32 0.0036580483, %v633_v33  ;;  %v599_v54 = vmul.f32 %v598_v61, %v2489_v13 }
  0xe2   : > { %v2539_v51 = vmul.f32 %v829_v42, %v493_v36  ;;  %v610_v62 = vmul.f32 %v609_v34, %v2489_v13  ;;  %v483_v36 = vpop.permute.xlu1 %482  ;;  %v645_v48 = vadd.f32 0.014752088, %v644_v11  ;;  %v713_v49 = vmul.f32 %v712_v37, %v2479_v56 }
  0xe3   : > { %v696_v63 = vadd.f32 %v2071_v35, %v695_v55  ;;  %v2560_v17 = vadd.f32 %v483_v36, %v459_v12  ;;  %v2566_v26 = vadd.f32 %v483_v36, %v460_v28  ;;  %v584_v34 = vor.u32 1.1754944e-38, %v583_v53 }
  0xe4   : > { %881 = vrot.lane.b32.xlu1 %v2539_v51, %s2171_s20  ;;  %v2554_v23 = vadd.f32 1.0, %v610_v62  ;;  %v646_v14 = vmul.f32 %v645_v48, %v2534_v43  ;;  %v635_v58 = vmul.f32 %v634_v29, %v2534_v43  ;;  %v600_v62 = vadd.f32 1.1283791, %v599_v54 }
  0xe5   : > { %v700_v30 = vsel %vm699_vm6, %v2071_v35, %v696_v63  ;;  %v560_v35 = vadd.f32 1.1283791, %v559_v7  ;;  %v730_v7 = vmul.f32 %v729_v60, %v2479_v56  ;;  %v2572_v31 = vmul.f32 0.70710677, %v2560_v17 }
  0xe6   : > { %v705_v16 = vsel %vm702_vm7, %v704_v4, %v700_v30  ;;  %2072 = vrcp.f32 %v2554_v23  ;;  %v2575_v50 = vmul.f32 0.70710677, %v2566_v26  ;;  %v647_v39 = vadd.f32 0.112945676, %v646_v14 }
  0xe7   : > { %v706_v24 = vmul.f32 %v705_v16, %v681_v47  ;;  %v561_v57 = vmul.f32 %v560_v35, %v2405_v10  ;;  %v749_v20 = vmul.f32 %v2572_v31, %v2572_v31  ;;  %v580_v10 = vsel %vm2585_vm10, %v2516_v5, %v576_v6 }
  0xe8   : > { %v789_v13 = vmul.f32 %v2575_v50, %v2575_v50  ;;  %v2604_v63 = vadd.f32 1.0, %v730_v7  ;;  %v621_v12 = vand.u32 2147483647, %v2554_v23  ;;  %v623_v5 = vand.u32 2147483648, %v2554_v23 }
  0xe9   : > { %v1948_v38 = vclamps-f32 %v706_v24, 1.0  ;;  %v2606_v2 = vmin.f32 %v749_v20, 16.0  ;;  %v648_v30 = vmul.f32 %v647_v39, %v2534_v43  ;;  %v636_v18 = vadd.f32 0.05243302, %v635_v58 }
  0xea   : > { %v2608_v4 = vmin.f32 %v789_v13, 16.0  ;;  %v585_v24 = vsel %vm2589_vm11, %v584_v34, %v580_v10  ;;  %vm617_vm13 = vweird.f32 %v2554_v23  ;;  %v624_v35 = vor.u32 1.1754944e-38, %v623_v5 }
  0xeb   : > { %v833_v42 = vadd.f32 1.0, %v1948_v38  ;;  %v751_v40 = vmul.f32 2.1237322e-06, %v2606_v2  ;;  %v762_v15 = vmul.f32 3.8918573e-05, %v2606_v2  ;;  %v601_v6 = vmul.f32 %v600_v62, %v2470_v44 }
  0xec   : > { %v2073_v55 = vpop.eup %2072  ;;  %v791_v16 = vmul.f32 2.1237322e-06, %v2608_v4  ;;  %v649_v33 = vadd.f32 0.4994258, %v648_v30  ;;  %vm622_vm15 = vcmp.eq.f32.partialorder %v621_v12, 8.507059e+37  ;;  %v637_v29 = vmul.f32 %v636_v18, %v2534_v43 }
  0xed   : > { %v2578_v46 = vmul.f32 %v833_v42, %v497_v9  ;;  %v613_v27 = vmul.f32 %v2073_v55, %v2554_v23  ;;  %vm618_vm12 = vweird.f32 %v2073_v55  ;;  %v802_v9 = vmul.f32 3.8918573e-05, %v2608_v4 }
  0xee   : > { %v752_v36 = vadd.f32 0.00028619796, %v751_v40  ;;  %v763_v37 = vadd.f32 0.001143296, %v762_v15  ;;  %v792_v38 = vadd.f32 0.00028619796, %v791_v16  ;;  %vm619_vm14 = vmor %vm617_vm13, %vm618_vm12  ;;  %v650_v61 = vmul.f32 %v649_v33, %v2534_v43 }
  0xef   : > { %885 = vrot.lane.b32.xlu0 %v2578_v46, %s2171_s20  ;;  %v614_v45 = vsub.f32 1.0, %v613_v27  ;;  %v803_v53 = vadd.f32 0.001143296, %v802_v9  ;;  %2074 = vrcp.f32 %v2604_v63  ;;  %v586_v47 = vmul.f32 %v585_v24, %v561_v57 }
  0xf0   : > { %v753_v11 = vmul.f32 %v752_v36, %v2606_v2  ;;  %v764_v22 = vmul.f32 %v763_v37, %v2606_v2  ;;  %v2625_v7 = vadd.f32 1.0, %v650_v61  ;;  %v793_v54 = vmul.f32 %v792_v38, %v2608_v4 }
  0xf1   : > { %v615_v28 = vmul.f32 %v2073_v55, %v614_v45  ;;  %v804_v32 = vmul.f32 %v803_v53, %v2608_v4  ;;  %v714_v20 = vadd.f32 0.0036580483, %v713_v49  ;;  %v638_v13 = vadd.f32 0.18741608, %v637_v29 }
  0xf2   : > { %v765_v23 = vadd.f32 0.014752088, %v764_v22  ;;  %2076 = vrcp.f32 %v2625_v7  ;;  %v754_v44 = vadd.f32 0.0036580483, %v753_v11  ;;  %v794_v34 = vadd.f32 0.0036580483, %v793_v54 }
  0xf3   : > { %v616_v60 = vadd.f32 %v2073_v55, %v615_v28  ;;  %v805_v27 = vadd.f32 0.014752088, %v804_v32  ;;  %v495_v58 = vmul.f32 0.5, %v2459_v25  ;;  %v1945_v45 = vclamps-f32 %v586_v47, 1.0 }
  0xf4   : > { %v766_v10 = vmul.f32 %v765_v23, %v2606_v2  ;;  %v715_v12 = vmul.f32 %v714_v20, %v2479_v56  ;;  %v755_v5 = vmul.f32 %v754_v44, %v2606_v2  ;;  %v639_v30 = vmul.f32 %v638_v13, %v2534_v43 }
  0xf5   : > { %v620_v42 = vsel %vm619_vm14, %v2073_v55, %v616_v60  ;;  %v806_v49 = vmul.f32 %v805_v27, %v2608_v4  ;;  %v2636_v57 = vpop.eup %2074  ;;  %v795_v25 = vmul.f32 %v794_v34, %v2608_v4  ;;  %v830_v24 = vadd.f32 1.0, %v1945_v45 }
  0xf6   : > { %v625_v48 = vsel %vm622_vm15, %v624_v35, %v620_v42  ;;  %v767_v62 = vadd.f32 0.112945676, %v766_v10  ;;  %v716_v33 = vadd.f32 0.05243302, %v715_v12  ;;  %v756_v36 = vadd.f32 0.05243302, %v755_v5 }
  0xf7   : > { %v626_v14 = vmul.f32 %v625_v48, %v601_v6  ;;  %v807_v28 = vadd.f32 0.112945676, %v806_v49  ;;  %v733_v43 = vmul.f32 %v2636_v57, %v2604_v63  ;;  %v640_v60 = vadd.f32 1.1283791, %v639_v30 }
  0xf8   : > { %v768_v15 = vmul.f32 %v767_v62, %v2606_v2  ;;  %v2077_v16 = vpop.eup %2076  ;;  %v494_v61 = vmul.f32 0.5, %v2399_v8  ;;  %v663_v11 = vand.u32 2147483648, %v2625_v7  ;;  %v796_v22 = vadd.f32 0.05243302, %v795_v25 }
  0xf9   : > { %v1946_v55 = vclamps-f32 %v626_v14, 1.0  ;;  %v653_v18 = vmul.f32 %v2077_v16, %v2625_v7  ;;  %v808_v37 = vmul.f32 %v807_v28, %v2608_v4  ;;  %vm658_vm0 = vweird.f32 %v2077_v16 }
  0xfa   : > { %v769_v9 = vadd.f32 0.4994258, %v768_v15  ;;  %v661_v42 = vand.u32 2147483647, %v2625_v7  ;;  %v2655_v48 = vmul.f32 %v830_v24, %v494_v61  ;;  %v717_v23 = vmul.f32 %v716_v33, %v2479_v56  ;;  %v2775_v24 = vld [vmem:[%s3602_s1] sm:$0xff] }
  0xfb   : > { %v831_v39 = vadd.f32 1.0, %v1946_v55  ;;  %v654_v35 = vsub.f32 1.0, %v653_v18  ;;  %v809_v53 = vadd.f32 0.4994258, %v808_v37  ;;  %v757_v54 = vmul.f32 %v756_v36, %v2606_v2 }
  0xfc   : > { %v770_v38 = vmul.f32 %v769_v9, %v2606_v2  ;;  %v734_v32 = vsub.f32 1.0, %v733_v43  ;;  %vm657_vm1 = vweird.f32 %v2625_v7  ;;  %v664_v47 = vor.u32 1.1754944e-38, %v663_v11 }
  0xfd   : > { %v2639_v40 = vmul.f32 %v831_v39, %v495_v58  ;;  %v655_v6 = vmul.f32 %v2077_v16, %v654_v35  ;;  %v810_v14 = vmul.f32 %v809_v53, %v2608_v4  ;;  %vm659_vm2 = vmor %vm657_vm1, %vm658_vm0  ;;  %v797_v20 = vmul.f32 %v796_v22, %v2608_v4 }
  0xfe   : > { %v2653_v29 = vadd.f32 1.0, %v770_v38  ;;  %v641_v55 = vmul.f32 %v640_v60, %v2513_v0  ;;  %vm662_vm3 = vcmp.eq.f32.partialorder %v661_v42, 8.507059e+37  ;;  %v718_v10 = vadd.f32 0.18741608, %v717_v23 }
  0xff   : > { %883 = vrot.lane.b32.xlu2 %v2639_v40, %s2171_s20  ;;  %v656_v8 = vadd.f32 %v2077_v16, %v655_v6  ;;  %v2663_v44 = vadd.f32 1.0, %v810_v14  ;;  %v758_v27 = vadd.f32 0.18741608, %v757_v54  ;;  %v735_v7 = vmul.f32 %v2636_v57, %v734_v32 }
 0x100   : > { %2078 = vrcp.f32 %v2653_v29  ;;  %v798_v39 = vadd.f32 0.18741608, %v797_v20  ;;  %v719_v12 = vmul.f32 %v718_v10, %v2479_v56  ;;  %v496_v0 = vmul.f32 0.5, %v2500_v41 }
 0x101   : > { %v660_v13 = vsel %vm659_vm2, %v2077_v16, %v656_v8  ;;  %2080 = vrcp.f32 %v2663_v44  ;;  %v759_v5 = vmul.f32 %v758_v27, %v2606_v2  ;;  %v736_v30 = vadd.f32 %v2636_v57, %v735_v7 }
 0x102   : > { %v665_v34 = vsel %vm662_vm3, %v664_v47, %v660_v13  ;;  %vm738_vm4 = vweird.f32 %v2636_v57  ;;  %v743_v15 = vand.u32 2147483648, %v2604_v63  ;;  %vm737_vm5 = vweird.f32 %v2604_v63 }
 0x103   : > { %v666_v58 = vmul.f32 %v665_v34, %v641_v55  ;;  %v799_v18 = vmul.f32 %v798_v39, %v2608_v4  ;;  %v741_v56 = vand.u32 2147483647, %v2604_v63  ;;  %v783_v2 = vand.u32 2147483648, %v2653_v29  ;;  %vm2684_vm6 = vmor %vm737_vm5, %vm738_vm4 }
 0x104   : > { %v760_v33 = vadd.f32 1.1283791, %v759_v5  ;;  %v781_v37 = vand.u32 2147483647, %v2653_v29  ;;  %v720_v43 = vadd.f32 1.1283791, %v719_v12  ;;  %v740_v63 = vsel %vm2684_vm6, %v2636_v57, %v736_v30  ;;  %v2716_v12 = vpop.permute.xlu1 %865 }
 0x105   : > { %v1947_v45 = vclamps-f32 %v666_v58, 1.0  ;;  %v744_v4 = vor.u32 1.1754944e-38, %v743_v15  ;;  %vm777_vm8 = vweird.f32 %v2653_v29  ;;  %v800_v38 = vadd.f32 1.1283791, %v799_v18 }
 0x106   : > { %v2079_v62 = vpop.eup %2078  ;;  %v823_v61 = vand.u32 2147483648, %v2663_v44  ;;  %v784_v11 = vor.u32 1.1754944e-38, %v783_v2  ;;  %v821_v53 = vand.u32 2147483647, %v2663_v44  ;;  %vm742_vm11 = vcmp.eq.f32.partialorder %v741_v56, 8.507059e+37 }
 0x107   : > { %889 = vrot.lane.b32.xlu2 %v2655_v48, %s2171_s20  ;;  %v773_v49 = vmul.f32 %v2079_v62, %v2653_v29  ;;  %v832_v16 = vadd.f32 1.0, %v1947_v45  ;;  %v2081_v25 = vpop.eup %2080  ;;  %vm778_vm7 = vweird.f32 %v2079_v62  ;;  %v761_v57 = vmul.f32 %v760_v33, %v2572_v31  ;;  %v2780_v33 = vld [vmem:[%s3602_s1 + $0x8] sm:$0xff] }
 0x108   : > { %v813_v9 = vmul.f32 %v2081_v25, %v2663_v44  ;;  %vm779_vm9 = vmor %vm777_vm8, %vm778_vm7  ;;  %vm818_vm10 = vweird.f32 %v2081_v25  ;;  %vm782_vm12 = vcmp.eq.f32.partialorder %v781_v37, 8.507059e+37  ;;  %v745_v42 = vsel %vm742_vm11, %v744_v4, %v740_v63  ;;  %v2796_v63 = vld [vmem:[%s3605_s4 + $0x10] sm:$0xff] }
 0x109   : > { %v774_v28 = vsub.f32 1.0, %v773_v49  ;;  %v2680_v41 = vmul.f32 %v832_v16, %v496_v0  ;;  %vm817_vm13 = vweird.f32 %v2663_v44  ;;  %v721_v29 = vmul.f32 %v720_v43, %v2455_v21 }
 0x10a   : > { %v814_v60 = vsub.f32 1.0, %v813_v9  ;;  %vm819_vm14 = vmor %vm817_vm13, %vm818_vm10  ;;  %v824_v32 = vor.u32 1.1754944e-38, %v823_v61  ;;  %v801_v8 = vmul.f32 %v800_v38, %v2575_v50  ;;  %vm822_vm15 = vcmp.eq.f32.partialorder %v821_v53, 8.507059e+37 }
 0x10b   : > { %v775_v36 = vmul.f32 %v2079_v62, %v774_v28  ;;  %891 = vrot.lane.b32.xlu0 %v2680_v41, %s2171_s20  ;;  %v746_v20 = vmul.f32 %v745_v42, %v721_v29  ;;  %v499_v10 = vmul.f32 0.5, %v2560_v17  ;;  %v500_v7 = vmul.f32 0.5, %v2566_v26  ;;  %v2759_v28 = vld [vmem:[%s3605_s4] sm:$0xff] }
 0x10c   : > { %v815_v22 = vmul.f32 %v2081_v25, %v814_v60  ;;  %v498_v17 = vmul.f32 0.5, %v2444_v1  ;;  %v2724_v0 = vpop.permute.xlu1 %923  ;;  %v897_v56 = vlaneseq  ;;  %v2789_v37 = vperm.slane %v2780_v33, 0 }
 0x10d   : > { %v776_v35 = vadd.f32 %v2079_v62, %v775_v36  ;;  %v1949_v27 = vclamps-f32 %v746_v20, 1.0  ;;  %v2786_v36 = vperm.slane %v2775_v24, 0 }
 0x10e   : > { %v816_v54 = vadd.f32 %v2081_v25, %v815_v22  ;;  %v2770_v9 = vand.u32 127, %v897_v56 }
 0x10f   : > { %v780_v6 = vsel %vm779_vm9, %v2079_v62, %v776_v35  ;;  %v834_v39 = vadd.f32 1.0, %v1949_v27  ;;  %v856_v62 = vpop.permute.xlu2 %855  ;;  %v2872_v27 = vperm.slane %v2775_v24, 1 }
 0x110   : > { %v785_v23 = vsel %vm782_vm12, %v784_v11, %v780_v6  ;;  %v820_v47 = vsel %vm819_vm14, %v2081_v25, %v816_v54  ;;  %vm899_vm0 = vcmp.lt.s32.totalorder %v2770_v9, 17  ;;  %v873_v11 = vmul.f32 %v856_v62, %v2539_v51  ;;  %v2831_v54 = vld [vmem:[%s3605_s4 + $0x18] sm:$0xff] }
 0x111   : > { %v786_v14 = vmul.f32 %v785_v23, %v761_v57  ;;  %v825_v13 = vsel %vm822_vm15, %v824_v32, %v820_v47  ;;  %v2714_v45 = vmul.f32 %v834_v39, %v498_v17  ;;  %v874_v22 = vmul.f32 %v856_v62, %v2655_v48 }
 0x112   : > { %v826_v31 = vmul.f32 %v825_v13, %v801_v8  ;;  %v2176_v23 = vmov 5   ;;  %vm966_vm1 = vcmp.lt.s32.totalorder %v2770_v9, 16  ;;  %vm1033_vm2 = vcmp.lt.s32.totalorder %v2770_v9, 15 }
 0x113   : > { %v1950_v55 = vclamps-f32 %v786_v14, 1.0  ;;  %952 = vrot.lane.b32.xlu0 %v2639_v40, %s2172_s21  ;;  %vm1100_vm3 = vcmp.lt.s32.totalorder %v2770_v9, 1  ;;  %vm1167_vm4 = vcmp.lt.s32.totalorder %v2770_v9, 127  ;;  %vm1234_vm5 = vcmp.lt.s32.totalorder %v2770_v9, 113 }
 0x114   : > { %v1951_v44 = vclamps-f32 %v826_v31, 1.0  ;;  %v2732_v5 = vpop.permute.xlu1 %931  ;;  %v2180_v31 = vmov 6   ;;  %vm1301_vm6 = vcmp.lt.s32.totalorder %v2770_v9, 112  ;;  %vm1368_vm7 = vcmp.lt.s32.totalorder %v2770_v9, 111 }
 0x115   : > { %v835_v34 = vadd.f32 1.0, %v1950_v55 }
 0x116   : > { %v836_v58 = vadd.f32 1.0, %v1951_v44 }
 0x117   : > { %v2703_v21 = vmul.f32 %v835_v34, %v499_v10  ;;  %v2720_v26 = vpop.permute.xlu2 %870 }
 0x118   : > { %v2708_v50 = vmul.f32 %v836_v58, %v500_v7  ;;  %v2875_v7 = vperm.slane %v2780_v33, 1 }
 0x119   : > { %887 = vrot.lane.b32.xlu1 %v2703_v21, %s2171_s20  ;;  %v879_v62 = vmul.f32 %v2720_v26, %v2703_v21 }
 0x11a   : > { %895 = vrot.lane.b32.xlu2 %v2708_v50, %s2171_s20  ;;  %v880_v17 = vmul.f32 %v2720_v26, %v2708_v50 }
 0x11b   : > { %958 = vrot.lane.b32.xlu0 %v2655_v48, %s2172_s21 }
 0x11c   : > { %v2742_v30 = vpop.permute.xlu1 %986 }
 0x11f   : > { %v2729_v1 = vpop.permute.xlu2 %927 }
 0x121   : > { %893 = vrot.lane.b32.xlu1 %v2714_v45, %s2171_s20  ;;  %s2177_s20 = smov 112  }
 0x122   : > { %950 = vrot.lane.b32.xlu2 %v2539_v51, %s2172_s21 }
 0x123   : > { %964 = vrot.lane.b32.xlu0 %v2708_v50, %s2172_s21 }
 0x124   : > { %v2750_v16 = vpop.permute.xlu1 %998 }
 0x127   : > { %v2736_v49 = vpop.permute.xlu2 %990 }
 0x129   : > { %954 = vrot.lane.b32.xlu1 %v2578_v46, %s2172_s21 }
 0x12a   : > { %956 = vrot.lane.b32.xlu2 %v2703_v21, %s2172_s21 }
 0x12b   : > { %1023 = vrot.lane.b32.xlu0 %v2703_v21, %s2173_s22 }
 0x12c   : > { %v2762_v18 = vpop.permute.xlu1 %1061 }
 0x12f   : > { %v2744_v15 = vpop.permute.xlu2 %1053 }
 0x131   : > { %960 = vrot.lane.b32.xlu1 %v2680_v41, %s2172_s21 }
 0x132   : > { %962 = vrot.lane.b32.xlu2 %v2714_v45, %s2172_s21 }
 0x133   : > { %1029 = vrot.lane.b32.xlu0 %v2714_v45, %s2173_s22 }
 0x137   : > { %v2753_v25 = vpop.permute.xlu2 %1065 }
 0x139   : > { %1019 = vrot.lane.b32.xlu1 %v2639_v40, %s2173_s22 }
 0x13a   : > { %1017 = vrot.lane.b32.xlu2 %v2539_v51, %s2173_s22 }
 0x13b   : > { %1088 = vrot.lane.b32.xlu0 %v2578_v46, %s2174_s23 }
 0x141   : > { %1025 = vrot.lane.b32.xlu1 %v2655_v48, %s2173_s22 }
 0x142   : > { %1021 = vrot.lane.b32.xlu2 %v2578_v46, %s2173_s22 }
 0x143   : > { %1094 = vrot.lane.b32.xlu0 %v2680_v41, %s2174_s23 }
 0x149   : > { %1031 = vrot.lane.b32.xlu1 %v2708_v50, %s2173_s22 }
 0x14a   : > { %1027 = vrot.lane.b32.xlu2 %v2680_v41, %s2173_s22  ;;  %s1873_s22 = scalar_lea.hbm %s3609_s8, %s1967_s19 }
 0x14b   : > { %1120 = vperm.xlu0 %2045, %v2759_v28   ;;  %s1877_s25 = sshll.u32 %s1873_s22, 4  ;;  %s1878_s25 = int_to_ptr.hbm [resolvable:$true] %s1877_s25 }
 0x14c   : > { %s2116_s10 = sshra.s32 %s1878_s25, 4  ;;  %s2117_s10 = int_to_ptr.hbm [resolvable:$true] %s2116_s10 }
 0x14d   : > { %p2123_p0 = scmp.lt.s32.totalorder %s2117_s10, %s3609_s8 }
 0x151   : > { %1084 = vrot.lane.b32.xlu1 %v2539_v51, %s2174_s23 }
 0x152   : > { %1086 = vrot.lane.b32.xlu2 %v2639_v40, %s2174_s23 }
 0x153   : > { %1163 = vrot.lane.b32.xlu0 %v2714_v45, %s2175_s26 }
 0x156   : > { %v882_v43 = vpop.permute.xlu1 %881 }
 0x159   : > { %v884_v2 = vpop.permute.xlu2 %883  ;;  %1090 = vrot.lane.b32.xlu1 %v2703_v21, %s2174_s23 }
 0x15a   : > { %1092 = vrot.lane.b32.xlu2 %v2655_v48, %s2174_s23 }
 0x15b   : > { %1128 = vperm.xlu0 %2045, %v2796_v63  }
 0x161   : > { %v890_v4 = vpop.permute.xlu2 %889  ;;  %1096 = vrot.lane.b32.xlu1 %v2714_v45, %s2174_s23 }
 0x162   : > { %v900_v60 = vsel %vm899_vm0, %v882_v43, %v890_v4  ;;  %v904_v35 = vsel %vm899_vm0, %v890_v4, %v882_v43  ;;  %1098 = vrot.lane.b32.xlu2 %v2708_v50, %s2174_s23  ;;  %s2178_s23 = smov 113  }
 0x163   : > { %v910_v38 = vmul.f32 %v2786_v36, %v904_v35  ;;  %v911_v61 = vmul.f32 %v2789_v37, %v900_v60  ;;  %1161 = vrot.lane.b32.xlu0 %v2680_v41, %s2175_s26 }
 0x164   : > { %2049 = vset.pattern.permute.xlu0 %v2176_v23 }
 0x165   : > { %v934_v53 = vmul.f32 %v2386_v59, %v910_v38  ;;  %v935_v57 = vmul.f32 %v2386_v59, %v911_v61  ;;  %v2822_v59 = vpop.permute.xlu0 %1057 }
 0x167   : > { %v2811_v6 = vadd.f32 %v934_v53, %v873_v11  ;;  %v2813_v42 = vadd.f32 %v935_v57, %v874_v22 }
 0x169   : > { %1157 = vrot.lane.b32.xlu1 %v2703_v21, %s2175_s26 }
 0x16a   : > { %1165 = vrot.lane.b32.xlu2 %v2708_v50, %s2175_s26 }
 0x16b   : > { %1291 = vrot.lane.b32.xlu0 %v2703_v21, %s2177_s20 }
 0x16d   : > { %v886_v29 = vpop.permute.xlu0 %885 }
 0x171   : > { %1132 = vperm.xlu1 %2046, %v2831_v54  }
 0x172   : > { %1155 = vrot.lane.b32.xlu2 %v2578_v46, %s2175_s26 }
 0x173   : > { %1195 = vperm.xlu0 %2049, %v2796_v63  }
 0x174   : > { %v896_v14 = vpop.permute.xlu2 %895 }
 0x179   : > { %1224 = vrot.lane.b32.xlu1 %v2703_v21, %s2178_s23 }
 0x17a   : > { %2047 = vset.pattern.permute.xlu1 %v2176_v23  ;;  %1232 = vrot.lane.b32.xlu2 %v2708_v50, %s2178_s23 }
 0x17b   : > { %1228 = vrot.lane.b32.xlu0 %v2680_v41, %s2178_s23 }
 0x17c   : > { %v951_v32 = vpop.permute.xlu2 %950 }
 0x17d   : > { %v892_v8 = vpop.permute.xlu0 %891 }
 0x17e   : > { %v2846_v47 = vsel %vm899_vm0, %v884_v2, %v892_v8  ;;  %v2850_v20 = vsel %vm899_vm0, %v892_v8, %v884_v2  ;;  %v2908_v8 = vld [vmem:[%s3605_s4 + $0x8] sm:$0xff] }
 0x181   : > { %1199 = vperm.xlu1 %2047, %v2831_v54  }
 0x182   : > { %1153 = vrot.lane.b32.xlu2 %v2639_v40, %s2175_s26 }
 0x183   : > { %1358 = vrot.lane.b32.xlu0 %v2703_v21, %s2179_s24 }
 0x184   : > { %v957_v55 = vpop.permute.xlu2 %956 }
 0x185   : > { %v2857_v13 = vpop.permute.xlu0 %952 }
 0x189   : > { %1222 = vrot.lane.b32.xlu1 %v2578_v46, %s2178_s23 }
 0x18a   : > { %2050 = vset.pattern.permute.xlu1 %v2180_v31  ;;  %1230 = vrot.lane.b32.xlu2 %v2714_v45, %s2178_s23 }
 0x18b   : > { %v888_v10 = vpop.permute.xlu1 %887  ;;  %1295 = vrot.lane.b32.xlu0 %v2680_v41, %s2177_s20 }
 0x18c   : > { %v903_v34 = vsel %vm899_vm0, %v888_v10, %v896_v14  ;;  %v907_v44 = vsel %vm899_vm0, %v896_v14, %v888_v10  ;;  %v963_v56 = vpop.permute.xlu2 %962 }
 0x18d   : > { %v916_v58 = vmul.f32 %v2786_v36, %v907_v44  ;;  %v917_v39 = vmul.f32 %v2789_v37, %v903_v34  ;;  %v959_v2 = vpop.permute.xlu0 %958 }
 0x18e   : > { %v967_v60 = vsel %vm966_vm1, %v951_v32, %v959_v2  ;;  %v971_v35 = vsel %vm966_vm1, %v959_v2, %v951_v32 }
 0x18f   : > { %v940_v43 = vmul.f32 %v2732_v5, %v916_v58  ;;  %v941_v4 = vmul.f32 %v2732_v5, %v917_v39  ;;  %v977_v38 = vmul.f32 %v2872_v27, %v971_v35  ;;  %v978_v61 = vmul.f32 %v2875_v7, %v967_v60 }
 0x191   : > { %v948_v21 = vadd.f32 %v940_v43, %v879_v62  ;;  %v949_v11 = vadd.f32 %v941_v4, %v880_v17  ;;  %1299 = vrot.lane.b32.xlu1 %v2708_v50, %s2177_s20  ;;  %v1001_v26 = vmul.f32 %v2742_v30, %v977_v38  ;;  %v1002_v22 = vmul.f32 %v2742_v30, %v978_v61 }
 0x192   : > { %1124 = vperm.xlu2 %2048, %v2908_v8  }
 0x193   : > { %v894_v5 = vpop.permute.xlu1 %893  ;;  %v2900_v14 = vadd.f32 %v1001_v26, %v2811_v6  ;;  %v2903_v32 = vadd.f32 %v1002_v22, %v2813_v42  ;;  %1187 = vperm.xlu0 %2049, %v2759_v28   ;;  %v877_v6 = vmul.f32 %v2716_v12, %v2578_v46  ;;  %v878_v42 = vmul.f32 %v2716_v12, %v2714_v45 }
 0x194   : > { %v902_v53 = vsel %vm899_vm0, %v886_v29, %v894_v5  ;;  %v906_v57 = vsel %vm899_vm0, %v894_v5, %v886_v29  ;;  %v2918_v29 = vpop.permute.xlu2 %1017 }
 0x195   : > { %v914_v30 = vmul.f32 %v2786_v36, %v906_v57  ;;  %v915_v10 = vmul.f32 %v2789_v37, %v902_v53  ;;  %v965_v34 = vpop.permute.xlu0 %964 }
 0x196   : > { %v970_v39 = vsel %vm966_vm1, %v957_v55, %v965_v34  ;;  %v974_v62 = vsel %vm966_vm1, %v965_v34, %v957_v55 }
 0x197   : > { %v938_v44 = vmul.f32 %v2729_v1, %v914_v30  ;;  %v939_v58 = vmul.f32 %v2729_v1, %v915_v10  ;;  %v983_v17 = vmul.f32 %v2872_v27, %v974_v62  ;;  %v984_v2 = vmul.f32 %v2875_v7, %v970_v39 }
 0x199   : > { %v946_v43 = vadd.f32 %v938_v44, %v877_v6  ;;  %v947_v4 = vadd.f32 %v939_v58, %v878_v42  ;;  %1266 = vperm.xlu1 %2050, %v2831_v54   ;;  %v1007_v12 = vmul.f32 %v2750_v16, %v983_v17  ;;  %v1008_v60 = vmul.f32 %v2750_v16, %v984_v2 }
 0x19a   : > { %1151 = vrot.lane.b32.xlu2 %v2539_v51, %s2175_s26  ;;  %v912_v16 = vmul.f32 %v2786_v36, %v2850_v20  ;;  %v2181_v20 = vmov 7   ;;  %v1042_v6 = vperm.slane %v2775_v24, 2  ;;  %v1043_v42 = vperm.slane %v2780_v33, 2 }
 0x19b   : > { %v955_v35 = vpop.permute.xlu1 %954  ;;  %v2935_v55 = vadd.f32 %v1007_v12, %v948_v21  ;;  %v2937_v61 = vadd.f32 %v1008_v60, %v949_v11  ;;  %2053 = vset.pattern.permute.xlu0 %v2180_v31  ;;  %2051 = vset.pattern.permute.xlu2 %v2176_v23 }
 0x19c   : > { %v969_v1 = vsel %vm966_vm1, %v955_v35, %v963_v56  ;;  %v973_v38 = vsel %vm966_vm1, %v963_v56, %v955_v35  ;;  %v913_v56 = vmul.f32 %v2789_v37, %v2846_v47  ;;  %v1022_v21 = vpop.permute.xlu2 %1021  ;;  %1262 = vperm.xlu0 %2053, %v2796_v63   ;;  %v936_v23 = vmul.f32 %v2724_v0, %v912_v16 }
 0x19d   : > { %v981_v26 = vmul.f32 %v2872_v27, %v973_v38  ;;  %v982_v22 = vmul.f32 %v2875_v7, %v969_v1  ;;  %v2950_v11 = vpop.permute.xlu0 %1023  ;;  %v876_v37 = vmul.f32 %v2338_v19, %v2680_v41  ;;  %v875_v47 = vmul.f32 %v2338_v19, %v2639_v40 }
 0x19e   : > { %v937_v36 = vmul.f32 %v2724_v0, %v913_v56 }
 0x19f   : > { %v1005_v5 = vmul.f32 %v2497_v52, %v981_v26  ;;  %v1006_v53 = vmul.f32 %v2497_v52, %v982_v22  ;;  %v944_v44 = vadd.f32 %v936_v23, %v875_v47 }
 0x1a0   : > { %v945_v58 = vadd.f32 %v937_v36, %v876_v37 }
 0x1a1   : > { %v1013_v57 = vadd.f32 %v1005_v5, %v946_v43  ;;  %v1014_v30 = vadd.f32 %v1006_v53, %v947_v4  ;;  %1159 = vrot.lane.b32.xlu1 %v2655_v48, %s2175_s26  ;;  %s2118_s26 = scalar_lea.hbm %s2117_s10, 8 }
 0x1a2   : > { %2052 = vset.pattern.permute.xlu1 %v2181_v20  ;;  %1220 = vrot.lane.b32.xlu2 %v2639_v40, %s2178_s23  ;;  %p2119_p11 = scmp.ne.s32.totalorder %s2117_s10, %s2118_s26 }
 0x1a3   : > { %v961_v10 = vpop.permute.xlu1 %960 }
 0x1a4   : > { %v968_v52 = vsel %vm966_vm1, %v2857_v13, %v961_v10  ;;  %v972_v0 = vsel %vm966_vm1, %v961_v10, %v2857_v13  ;;  %v1028_v39 = vpop.permute.xlu2 %1027  ;;  %1293 = vrot.lane.b32.xlu0 %v2655_v48, %s2177_s20  ;;  %p2120_p12 = pnand %p2119_p11, %p2266_p5 }
 0x1a5   : > { %v979_v19 = vmul.f32 %v2872_v27, %v972_v0  ;;  %v980_v34 = vmul.f32 %v2875_v7, %v968_v52  ;;  %v1030_v62 = vpop.permute.xlu0 %1029 }
 0x1a6   : > { %v1036_v2 = vsel %vm1033_vm2, %v1022_v21, %v1030_v62  ;;  %v1040_v43 = vsel %vm1033_vm2, %v1030_v62, %v1022_v21  ;;  %p2121_p13 = pneg %p2120_p12 }
 0x1a7   : > { %v1003_v13 = vmul.f32 %v2736_v49, %v979_v19  ;;  %v1004_v17 = vmul.f32 %v2736_v49, %v980_v34  ;;  %v1048_v27 = vmul.f32 %v1042_v6, %v1040_v43  ;;  %v1049_v4 = vmul.f32 %v1043_v42, %v1036_v2 }
 0x1a9   : > { %v1011_v7 = vadd.f32 %v1003_v13, %v944_v44  ;;  %v1012_v12 = vadd.f32 %v1004_v17, %v945_v58  ;;  %1289 = vrot.lane.b32.xlu1 %v2578_v46, %s2177_s20  ;;  %v1072_v60 = vmul.f32 %v2762_v18, %v1048_v27  ;;  %v1073_v35 = vmul.f32 %v2762_v18, %v1049_v4 }
 0x1aa   : > { %1297 = vrot.lane.b32.xlu2 %v2714_v45, %s2177_s20 }
 0x1ab   : > { %v1020_v1 = vpop.permute.xlu1 %1019  ;;  %v2994_v26 = vadd.f32 %v1072_v60, %v1013_v57  ;;  %v2996_v22 = vadd.f32 %v1073_v35, %v1014_v30 }
 0x1ac   : > { %v1035_v49 = vsel %vm1033_vm2, %v1020_v1, %v1028_v39  ;;  %v1039_v38 = vsel %vm1033_vm2, %v1028_v39, %v1020_v1  ;;  %v1087_v21 = vpop.permute.xlu2 %1086  ;;  %1254 = vperm.xlu0 %2053, %v2759_v28  }
 0x1ad   : > { %v1046_v16 = vmul.f32 %v1042_v6, %v1039_v38  ;;  %v1047_v56 = vmul.f32 %v1043_v42, %v1035_v49  ;;  %v2998_v5 = vpop.permute.xlu0 %1088 }
 0x1af   : > { %v1070_v18 = vmul.f32 %v2822_v59, %v1046_v16  ;;  %v1071_v53 = vmul.f32 %v2822_v59, %v1047_v56 }
 0x1b1   : > { %1366 = vrot.lane.b32.xlu1 %v2708_v50, %s2179_s24  ;;  %v3005_v23 = vadd.f32 %v1070_v18, %v1011_v7  ;;  %v3007_v57 = vadd.f32 %v1071_v53, %v1012_v12 }
 0x1b2   : > { %1191 = vperm.xlu2 %2051, %v2908_v8  }
 0x1b3   : > { %v1026_v30 = vpop.permute.xlu1 %1025 }
 0x1b4   : > { %v1034_v36 = vsel %vm1033_vm2, %v2918_v29, %v1026_v30  ;;  %v1038_v37 = vsel %vm1033_vm2, %v1026_v30, %v2918_v29  ;;  %v1093_v50 = vpop.permute.xlu2 %1092  ;;  %2059 = vset.pattern.permute.xlu0 %v2181_v20 }
 0x1b5   : > { %v1044_v59 = vmul.f32 %v1042_v6, %v1038_v37  ;;  %v1045_v47 = vmul.f32 %v1043_v42, %v1034_v36  ;;  %v1095_v10 = vpop.permute.xlu0 %1094  ;;  %1321 = vperm.xlu0 %2059, %v2759_v28  }
 0x1b6   : > { %v3022_v19 = vsel %vm1100_vm3, %v1087_v21, %v1095_v10  ;;  %v3026_v29 = vsel %vm1100_vm3, %v1095_v10, %v1087_v21 }
 0x1b7   : > { %v1068_v52 = vmul.f32 %v2744_v15, %v1044_v59  ;;  %v1069_v0 = vmul.f32 %v2744_v15, %v1045_v47 }
 0x1b9   : > { %1333 = vperm.xlu1 %2052, %v2831_v54   ;;  %v1076_v34 = vadd.f32 %v1068_v52, %v2900_v14  ;;  %v1077_v44 = vadd.f32 %v1069_v0, %v2903_v32 }
 0x1ba   : > { %1218 = vrot.lane.b32.xlu2 %v2539_v51, %s2178_s23 }
 0x1bb   : > { %v1032_v58 = vpop.permute.xlu1 %1031  ;;  %2055 = vset.pattern.permute.xlu2 %v2181_v20 }
 0x1bc   : > { %v1037_v15 = vsel %vm1033_vm2, %v2950_v11, %v1032_v58  ;;  %v1041_v39 = vsel %vm1033_vm2, %v1032_v58, %v2950_v11  ;;  %v1099_v17 = vpop.permute.xlu2 %1098 }
 0x1bd   : > { %v1050_v62 = vmul.f32 %v1042_v6, %v1041_v39  ;;  %v1051_v13 = vmul.f32 %v1043_v42, %v1037_v15  ;;  %v1121_v14 = vpop.permute.xlu0 %1120  ;;  %2062 = vset.pattern.permute.xlu0 %v2167_v3  ;;  %v3054_v6 = vperm.slane %v2775_v24, 3  ;;  %v3057_v42 = vperm.slane %v2780_v33, 3 }
 0x1bf   : > { %v1074_v32 = vmul.f32 %v2753_v25, %v1050_v62  ;;  %v1075_v2 = vmul.f32 %v2753_v25, %v1051_v13  ;;  %v3117_v62 = vperm.slane %v2775_v24, 5  ;;  %v3120_v13 = vperm.slane %v2780_v33, 5 }
 0x1c1   : > { %1226 = vrot.lane.b32.xlu1 %v2655_v48, %s2178_s23  ;;  %v3047_v11 = vadd.f32 %v1074_v32, %v2935_v55  ;;  %v3050_v43 = vadd.f32 %v1075_v2, %v2937_v61  ;;  %s299_s23 = scalar_lea.vmem [#allocation2], %s1941_s18  ;;  %s2122_s18 = scalar_lea.hbm %s3609_s8, 16 }
 0x1c2   : > { %2054 = vset.pattern.permute.xlu1 %v2180_v31  ;;  %1287 = vrot.lane.b32.xlu2 %v2639_v40, %s2177_s20  ;;  %p2124_p1 = scmp.lt.s32.totalorder %s2122_s18, %s2118_s26 }
 0x1c3   : > { %v1085_v25 = vpop.permute.xlu1 %1084 }
 0x1c4   : > { %v1101_v27 = vsel %vm1100_vm3, %v1085_v25, %v1093_v50  ;;  %v1105_v4 = vsel %vm1100_vm3, %v1093_v50, %v1085_v25  ;;  %v1166_v61 = vpop.permute.xlu2 %1165  ;;  %p2125_p2 = por %p2124_p1, %p2123_p0 }
 0x1c5   : > { %v1111_v55 = vmul.f32 %v3054_v6, %v1105_v4  ;;  %v1112_v31 = vmul.f32 %v3057_v42, %v1101_v27  ;;  %v1164_v7 = vpop.permute.xlu0 %1163 }
 0x1c6   : > { %p2126_p3 = pnand %p2125_p2, %p2121_p13 }
 0x1c7   : > { %v1135_v12 = vmul.f32 %v1121_v14, %v1111_v55  ;;  %v1136_v60 = vmul.f32 %v1121_v14, %v1112_v31 }
 0x1c9   : > { %v3067_v35 = vadd.f32 %v1135_v12, %v1076_v34  ;;  %v3069_v1 = vadd.f32 %v1136_v60, %v1077_v44  ;;  %1356 = vrot.lane.b32.xlu1 %v2578_v46, %s2179_s24  ;;  %v2182_v34 = vmov 8  }
 0x1ca   : > { %1364 = vrot.lane.b32.xlu2 %v2714_v45, %s2179_s24 }
 0x1cb   : > { %v1091_v49 = vpop.permute.xlu1 %1090 }
 0x1cc   : > { %v1104_v38 = vsel %vm1100_vm3, %v1091_v49, %v1099_v17  ;;  %v1108_v16 = vsel %vm1100_vm3, %v1099_v17, %v1091_v49  ;;  %v1156_v56 = vpop.permute.xlu2 %1155 }
 0x1cd   : > { %v1129_v21 = vpop.permute.xlu0 %1128  ;;  %v1170_v18 = vsel %vm1167_vm4, %v1156_v56, %v1164_v7  ;;  %v1174_v46 = vsel %vm1167_vm4, %v1164_v7, %v1156_v56  ;;  %v1117_v17 = vmul.f32 %v3054_v6, %v1108_v16  ;;  %v1118_v14 = vmul.f32 %v3057_v42, %v1104_v38 }
 0x1ce   : > { %v1182_v27 = vmul.f32 %v3117_v62, %v1170_v18  ;;  %v1183_v4 = vmul.f32 %v3120_v13, %v1174_v46  ;;  %v1114_v38 = vmul.f32 %v3057_v42, %v3022_v19 }
 0x1d1   : > { %1258 = vperm.xlu1 %2054, %v2908_v8  }
 0x1d2   : > { %1329 = vperm.xlu2 %2055, %v2796_v63  }
 0x1d3   : > { %v1097_v53 = vpop.permute.xlu1 %1096 }
 0x1d4   : > { %v1103_v30 = vsel %vm1100_vm3, %v2998_v5, %v1097_v53  ;;  %v1107_v45 = vsel %vm1100_vm3, %v1097_v53, %v2998_v5  ;;  %v1233_v59 = vpop.permute.xlu2 %1232 }
 0x1d5   : > { %v1115_v36 = vmul.f32 %v3054_v6, %v1107_v45  ;;  %v1116_v37 = vmul.f32 %v3057_v42, %v1103_v30  ;;  %v1162_v47 = vpop.permute.xlu0 %1161 }
 0x1d7   : > { %v1139_v50 = vmul.f32 %v1129_v21, %v1115_v36  ;;  %v1140_v10 = vmul.f32 %v1129_v21, %v1116_v37  ;;  %v1422_v36 = vld [vmem:[%s3606_s5 + $0x18] sm:$0xff] }
 0x1d9   : > { %v1147_v52 = vadd.f32 %v1139_v50, %v2994_v26  ;;  %v1148_v0 = vadd.f32 %v1140_v10, %v2996_v22  ;;  %2056 = vset.pattern.permute.xlu1 %v2182_v34  ;;  %v1420_v26 = vld [vmem:[%s3606_s5 + $0x8] sm:$0xff]  ;;  %v1421_v50 = vld [vmem:[%s3606_s5 + $0x10] sm:$0xff] }
 0x1da   : > { %1400 = vperm.xlu1 %2056, %v2831_v54   ;;  %1285 = vrot.lane.b32.xlu2 %v2539_v51, %s2177_s20 }
 0x1db   : > { %v1158_v44 = vpop.permute.xlu1 %1157  ;;  %2058 = vset.pattern.permute.xlu2 %v2182_v34  ;;  %1430 = vperm.xlu0 %2062, %v1420_v26  }
 0x1dc   : > { %v1171_v5 = vsel %vm1167_vm4, %v1158_v44, %v1166_v61  ;;  %v1175_v58 = vsel %vm1167_vm4, %v1166_v61, %v1158_v44  ;;  %v1154_v22 = vpop.permute.xlu2 %1153  ;;  %v1419_v44 = vld [vmem:[%s3606_s5] sm:$0xff] }
 0x1dd   : > { %v3106_v15 = vpop.permute.xlu0 %1291  ;;  %v3110_v54 = vsel %vm1167_vm4, %v1154_v22, %v1162_v47  ;;  %v3114_v39 = vsel %vm1167_vm4, %v1162_v47, %v1154_v22  ;;  %v1184_v30 = vmul.f32 %v3117_v62, %v1171_v5  ;;  %v1185_v45 = vmul.f32 %v3120_v13, %v1175_v58  ;;  %v1804_v5 = vld [vmem:[%s3608_s7] sm:$0xf] }
 0x1e2   : > { %1354 = vrot.lane.b32.xlu1 %v2639_v40, %s2179_s24  ;;  %1362 = vrot.lane.b32.xlu2 %v2680_v41, %s2179_s24 }
 0x1e3   : > { %v1133_v32 = vpop.permute.xlu1 %1132  ;;  %2057 = vset.pattern.permute.xlu1 %v2181_v20 }
 0x1e4   : > { %v1141_v2 = vmul.f32 %v1133_v32, %v1117_v17  ;;  %v1142_v25 = vmul.f32 %v1133_v32, %v1118_v14  ;;  %v1231_v61 = vpop.permute.xlu2 %1230  ;;  %v1180_v14 = vmul.f32 %v3117_v62, %v3110_v54  ;;  %v1181_v32 = vmul.f32 %v3120_v13, %v3114_v39 }
 0x1e5   : > { %v1196_v7 = vpop.permute.xlu0 %1195 }
 0x1e6   : > { %v1149_v55 = vadd.f32 %v1141_v2, %v3047_v11  ;;  %v1150_v31 = vadd.f32 %v1142_v25, %v3050_v43  ;;  %v1206_v12 = vmul.f32 %v1196_v7, %v1182_v27  ;;  %v1207_v40 = vmul.f32 %v1196_v7, %v1183_v4 }
 0x1e7   : > { %v1113_v43 = vmul.f32 %v3054_v6, %v3026_v29 }
 0x1e8   : > { %v3134_v20 = vadd.f32 %v1206_v12, %v1147_v52  ;;  %v3136_v60 = vadd.f32 %v1207_v40, %v1148_v0  ;;  %v3181_v52 = vperm.slane %v2780_v33, 6 }
 0x1ea   : > { %1325 = vperm.xlu1 %2057, %v2908_v8   ;;  %1396 = vperm.xlu2 %2058, %v2796_v63  }
 0x1eb   : > { %v1225_v41 = vpop.permute.xlu1 %1224 }
 0x1ec   : > { %v1238_v49 = vsel %vm1234_vm5, %v1225_v41, %v1233_v59  ;;  %v1242_v11 = vsel %vm1234_vm5, %v1233_v59, %v1225_v41  ;;  %v1125_v16 = vpop.permute.xlu2 %1124 }
 0x1ed   : > { %v3148_v56 = vpop.permute.xlu0 %1228  ;;  %v1137_v21 = vmul.f32 %v1125_v16, %v1113_v43  ;;  %v1138_v18 = vmul.f32 %v1125_v16, %v1114_v38  ;;  %v1252_v58 = vmul.f32 %v3181_v52, %v1242_v11 }
 0x1ef   : > { %v1145_v46 = vadd.f32 %v1137_v21, %v3005_v23  ;;  %v1146_v53 = vadd.f32 %v1138_v18, %v3007_v57 }
 0x1f2   : > { %1352 = vrot.lane.b32.xlu1 %v2539_v51, %s2179_s24  ;;  %1360 = vrot.lane.b32.xlu2 %v2655_v48, %s2179_s24  ;;  %s1875_s24 = sshll.u32 %s299_s23, 4  ;;  %s1876_s24 = int_to_ptr.vmem [resolvable:$true] %s1875_s24 }
 0x1f3   : > { %v1200_v63 = vpop.permute.xlu1 %1199  ;;  %2060 = vset.pattern.permute.xlu1 %v2182_v34  ;;  %2061 = vset.pattern.permute.xlu2 %v2167_v3 }
 0x1f4   : > { %v1208_v29 = vmul.f32 %v1200_v63, %v1184_v30  ;;  %v1209_v19 = vmul.f32 %v1200_v63, %v1185_v45  ;;  %v1152_v42 = vpop.permute.xlu2 %1151 }
 0x1f5   : > { %v3159_v57 = vpop.permute.xlu0 %1358 }
 0x1f6   : > { %v1216_v6 = vadd.f32 %v1208_v29, %v1149_v55  ;;  %v1217_v23 = vadd.f32 %v1209_v19, %v1150_v31  ;;  %v3222_v29 = vperm.slane %v2775_v24, 7 }
 0x1fa   : > { %1392 = vperm.xlu1 %2060, %v2908_v8   ;;  %1440 = vperm.xlu2 %2061, %v1422_v36   ;;  %v3178_v8 = vperm.slane %v2775_v24, 6 }
 0x1fb   : > { %v1223_v51 = vpop.permute.xlu1 %1222 }
 0x1fc   : > { %v1237_v37 = vsel %vm1234_vm5, %v1223_v51, %v1231_v61  ;;  %v1241_v48 = vsel %vm1234_vm5, %v1231_v61, %v1223_v51  ;;  %v3169_v59 = vpop.permute.xlu2 %1220 }
 0x1fd   : > { %v3171_v47 = vpop.permute.xlu0 %1295  ;;  %v1249_v4 = vmul.f32 %v3178_v8, %v1237_v37  ;;  %v1250_v55 = vmul.f32 %v3181_v52, %v1241_v48 }
 0x202   : > { %1388 = vperm.xlu1 %2060, %v2759_v28   ;;  %1435 = vperm.xlu2 %2061, %v1421_v50   ;;  %v1251_v28 = vmul.f32 %v3178_v8, %v1238_v49 }
 0x203   : > { %v1300_v10 = vpop.permute.xlu1 %1299 }
 0x204   : > { %v1298_v0 = vpop.permute.xlu2 %1297  ;;  %v1305_v19 = vsel %vm1301_vm6, %v3106_v15, %v1300_v10 }
 0x205   : > { %v1188_v34 = vpop.permute.xlu0 %1187 }
 0x20a   : > { %2063 = vset.pattern.permute.xlu1 %v2167_v3  ;;  %1807 = vperm.xlu2 %2061, %v1804_v5  }
 0x20b   : > { %1425 = vperm.xlu1 %2063, %v1419_v44   ;;  %v1267_v26 = vpop.permute.xlu1 %1266 }
 0x20c   : > { %v1275_v22 = vmul.f32 %v1267_v26, %v1251_v28  ;;  %v1276_v17 = vmul.f32 %v1267_v26, %v1252_v58  ;;  %v1192_v27 = vpop.permute.xlu2 %1191 }
 0x20d   : > { %v1204_v31 = vmul.f32 %v1192_v27, %v1180_v14  ;;  %v1205_v3 = vmul.f32 %v1192_v27, %v1181_v32 }
 0x20e   : > { %v1283_v2 = vadd.f32 %v1275_v22, %v1216_v6  ;;  %v1284_v25 = vadd.f32 %v1276_v17, %v1217_v23  ;;  %v1263_v61 = vpop.permute.xlu0 %1262  ;;  %v1309_v6 = vsel %vm1301_vm6, %v1300_v10, %v3106_v15  ;;  %v1318_v23 = vmul.f32 %v3222_v29, %v1305_v19 }
 0x20f   : > { %v3198_v7 = vadd.f32 %v1204_v31, %v1145_v46  ;;  %v3200_v12 = vadd.f32 %v1205_v3, %v1146_v53  ;;  %v1273_v40 = vmul.f32 %v1263_v61, %v1249_v4  ;;  %v1274_v41 = vmul.f32 %v1263_v61, %v1250_v55 }
 0x211   : > { %v1281_v49 = vadd.f32 %v1273_v40, %v3134_v20  ;;  %v1282_v39 = vadd.f32 %v1274_v41, %v3136_v60 }
 0x213   : > { %v1160_v54 = vpop.permute.xlu1 %1159 }
 0x214   : > { %v1168_v11 = vsel %vm1167_vm4, %v1152_v42, %v1160_v54  ;;  %v1172_v43 = vsel %vm1167_vm4, %v1160_v54, %v1152_v42  ;;  %v1219_v21 = vpop.permute.xlu2 %1218 }
 0x215   : > { %v1178_v38 = vmul.f32 %v3117_v62, %v1168_v11  ;;  %v1179_v16 = vmul.f32 %v3120_v13, %v1172_v43  ;;  %v1236_v43 = vsel %vm1234_vm5, %v3169_v59, %v3148_v56 }
 0x216   : > { %v1294_v13 = vpop.permute.xlu0 %1293 }
 0x217   : > { %v1202_v18 = vmul.f32 %v1188_v34, %v1178_v38  ;;  %v1203_v46 = vmul.f32 %v1188_v34, %v1179_v16  ;;  %v1240_v38 = vsel %vm1234_vm5, %v3148_v56, %v3169_v59  ;;  %v1247_v16 = vmul.f32 %v3178_v8, %v1236_v43  ;;  %v3278_v56 = vld [vmem:[%s3602_s1 + $0x18] ss:$0 sm:$0xff] }
 0x219   : > { %v1210_v53 = vadd.f32 %v1202_v18, %v3067_v35  ;;  %v1211_v30 = vadd.f32 %v1203_v46, %v3069_v1  ;;  %v3225_v35 = vperm.slane %v2780_v33, 7 }
 0x21b   : > { %v1290_v20 = vpop.permute.xlu1 %1289  ;;  %v1319_v42 = vmul.f32 %v3225_v35, %v1309_v6 }
 0x21c   : > { %v1304_v60 = vsel %vm1301_vm6, %v1290_v20, %v1298_v0  ;;  %v1308_v45 = vsel %vm1301_vm6, %v1298_v0, %v1290_v20  ;;  %v3217_v63 = vpop.permute.xlu2 %1287 }
 0x21d   : > { %v1316_v37 = vmul.f32 %v3222_v29, %v1304_v60  ;;  %v1317_v33 = vmul.f32 %v3225_v35, %v1308_v45 }
 0x21e   : > { %v1255_v48 = vpop.permute.xlu0 %1254 }
 0x223   : > { %v3219_v62 = vpop.permute.xlu1 %1366 }
 0x224   : > { %v1365_v1 = vpop.permute.xlu2 %1364 }
 0x227   : > { %v1322_v4 = vpop.permute.xlu0 %1321 }
 0x22b   : > { %v1334_v36 = vpop.permute.xlu1 %1333 }
 0x22c   : > { %v1342_v51 = vmul.f32 %v1334_v36, %v1318_v23  ;;  %v1343_v24 = vmul.f32 %v1334_v36, %v1319_v42  ;;  %v1330_v34 = vpop.permute.xlu2 %1329  ;;  %v1372_v42 = vsel %vm1368_vm7, %v3159_v57, %v3219_v62  ;;  %v1376_v36 = vsel %vm1368_vm7, %v3219_v62, %v3159_v57 }
 0x22d   : > { %v1340_v44 = vmul.f32 %v1330_v34, %v1316_v37  ;;  %v1341_v5 = vmul.f32 %v1330_v34, %v1317_v33  ;;  %v1303_v57 = vsel %vm1301_vm6, %v3217_v63, %v3171_v47  ;;  %v1307_v62 = vsel %vm1301_vm6, %v3171_v47, %v3217_v63 }
 0x22e   : > { %v1350_v50 = vadd.f32 %v1342_v51, %v1283_v2  ;;  %v1351_v0 = vadd.f32 %v1343_v24, %v1284_v25 }
 0x22f   : > { %v1348_v28 = vadd.f32 %v1340_v44, %v1281_v49  ;;  %v1349_v58 = vadd.f32 %v1341_v5, %v1282_v39 }
 0x233   : > { %v1227_v15 = vpop.permute.xlu1 %1226 }
 0x234   : > { %v1235_v10 = vsel %vm1234_vm5, %v1219_v21, %v1227_v15  ;;  %v1239_v26 = vsel %vm1234_vm5, %v1227_v15, %v1219_v21  ;;  %v1286_v14 = vpop.permute.xlu2 %1285  ;;  %v1248_v21 = vmul.f32 %v3181_v52, %v1240_v38 }
 0x235   : > { %v1245_v22 = vmul.f32 %v3178_v8, %v1235_v10  ;;  %v1246_v17 = vmul.f32 %v3181_v52, %v1239_v26  ;;  %v1302_v25 = vsel %vm1301_vm6, %v1286_v14, %v1294_v13  ;;  %v1306_v27 = vsel %vm1301_vm6, %v1294_v13, %v1286_v14 }
 0x236   : > { %v1312_v55 = vmul.f32 %v3222_v29, %v1302_v25  ;;  %v1313_v31 = vmul.f32 %v3225_v35, %v1306_v27  ;;  %v1315_v10 = vmul.f32 %v3225_v35, %v1307_v62 }
 0x237   : > { %v1269_v32 = vmul.f32 %v1255_v48, %v1245_v22  ;;  %v1270_v2 = vmul.f32 %v1255_v48, %v1246_v17 }
 0x238   : > { %v1336_v40 = vmul.f32 %v1322_v4, %v1312_v55  ;;  %v1337_v41 = vmul.f32 %v1322_v4, %v1313_v31 }
 0x239   : > { %v1277_v3 = vadd.f32 %v1269_v32, %v1210_v53  ;;  %v1278_v61 = vadd.f32 %v1270_v2, %v1211_v30  ;;  %v3273_v53 = vld [vmem:[%s3602_s1 + $0x10] ss:$0 sm:$0xff] }
 0x23b   : > { %v1357_v54 = vpop.permute.xlu1 %1356  ;;  %v3249_v49 = vadd.f32 %v1336_v40, %v1277_v3  ;;  %v3251_v39 = vadd.f32 %v1337_v41, %v1278_v61 }
 0x23c   : > { %v3253_v11 = vpop.permute.xlu2 %1362  ;;  %v1371_v18 = vsel %vm1368_vm7, %v1357_v54, %v1365_v1  ;;  %v1375_v46 = vsel %vm1368_vm7, %v1365_v1, %v1357_v54 }
 0x23d   : > { %v1383_v52 = vmul.f32 %v3273_v53, %v1371_v18  ;;  %v1384_v20 = vmul.f32 %v3278_v56, %v1375_v46 }
 0x243   : > { %v1259_v59 = vpop.permute.xlu1 %1258 }
 0x244   : > { %v1271_v8 = vmul.f32 %v1259_v59, %v1247_v16  ;;  %v1272_v30 = vmul.f32 %v1259_v59, %v1248_v21  ;;  %v1397_v13 = vpop.permute.xlu2 %1396 }
 0x245   : > { %v1407_v1 = vmul.f32 %v1397_v13, %v1383_v52  ;;  %v1408_v19 = vmul.f32 %v1397_v13, %v1384_v20 }
 0x246   : > { %v1279_v60 = vadd.f32 %v1271_v8, %v3198_v7  ;;  %v1280_v45 = vadd.f32 %v1272_v30, %v3200_v12  ;;  %v1385_v7 = vmul.f32 %v3273_v53, %v1372_v42  ;;  %v1386_v12 = vmul.f32 %v3278_v56, %v1376_v36 }
 0x247   : > { %v1415_v6 = vadd.f32 %v1407_v1, %v1348_v28  ;;  %v1416_v23 = vadd.f32 %v1408_v19, %v1349_v58 }
 0x24c   : > { %v1401_v51 = vpop.permute.xlu1 %1400  ;;  %v3292_v24 = vpop.permute.xlu2 %1360 }
 0x24d   : > { %v1409_v37 = vmul.f32 %v1401_v51, %v1385_v7  ;;  %v1410_v33 = vmul.f32 %v1401_v51, %v1386_v12 }
 0x24f   : > { %v1417_v34 = vadd.f32 %v1409_v37, %v1350_v50  ;;  %v1418_v44 = vadd.f32 %v1410_v33, %v1351_v0  ;;  %v1314_v0 = vmul.f32 %v3222_v29, %v1303_v57 }
 0x254   : > { %v1355_v48 = vpop.permute.xlu1 %1354  ;;  %v1441_v5 = vpop.permute.xlu2 %1440 }
 0x255   : > { %v3296_v28 = vadd.f32 %v1441_v5, %v1417_v34  ;;  %v3298_v58 = vadd.f32 %v1441_v5, %v1418_v44  ;;  %v1374_v19 = vsel %vm1368_vm7, %v3253_v11, %v1355_v48 }
 0x256   : > { %v1382_v12 = vmul.f32 %v3278_v56, %v1374_v19 }
 0x257   : > { %v3309_v15 = vmul.f32 0.70710677, %v3296_v28  ;;  %v3312_v50 = vmul.f32 0.70710677, %v3298_v58 }
 0x259   : > { %v1707_v26 = vmul.f32 %v3309_v15, %v3309_v15  ;;  %v1747_v22 = vmul.f32 %v3312_v50, %v3312_v50 }
 0x25b   : > { %v3320_v14 = vmin.f32 %v1707_v26, 16.0  ;;  %v3322_v47 = vmin.f32 %v1747_v22, 16.0 }
 0x25c   : > { %v1326_v17 = vpop.permute.xlu1 %1325  ;;  %v1436_v2 = vpop.permute.xlu2 %1435 }
 0x25d   : > { %v1338_v63 = vmul.f32 %v1326_v17, %v1314_v0  ;;  %v1339_v32 = vmul.f32 %v1326_v17, %v1315_v10  ;;  %v3324_v4 = vadd.f32 %v1436_v2, %v1415_v6  ;;  %v3326_v29 = vadd.f32 %v1436_v2, %v1416_v23  ;;  %v1431_v0 = vpop.permute.xlu0 %1430 }
 0x25e   : > { %v1709_v35 = vmul.f32 2.1237322e-06, %v3320_v14  ;;  %v1720_v55 = vmul.f32 3.8918573e-05, %v3320_v14  ;;  %v1749_v31 = vmul.f32 2.1237322e-06, %v3322_v47 }
 0x25f   : > { %v1346_v25 = vadd.f32 %v1338_v63, %v1279_v60  ;;  %v1347_v27 = vadd.f32 %v1339_v32, %v1280_v45  ;;  %v3332_v3 = vmul.f32 0.70710677, %v3324_v4  ;;  %v3335_v61 = vmul.f32 0.70710677, %v3326_v29 }
 0x260   : > { %v1760_v40 = vmul.f32 3.8918573e-05, %v3322_v47  ;;  %v1710_v41 = vadd.f32 0.00028619796, %v1709_v35  ;;  %v1721_v54 = vadd.f32 0.001143296, %v1720_v55  ;;  %v1370_v60 = vsel %vm1368_vm7, %v1355_v48, %v3253_v11 }
 0x261   : > { %v1627_v43 = vmul.f32 %v3332_v3, %v3332_v3  ;;  %v1667_v38 = vmul.f32 %v3335_v61, %v3335_v61  ;;  %v1750_v16 = vadd.f32 0.00028619796, %v1749_v31  ;;  %v1381_v36 = vmul.f32 %v3273_v53, %v1370_v60 }
 0x262   : > { %v1761_v21 = vadd.f32 0.001143296, %v1760_v40  ;;  %v1711_v46 = vmul.f32 %v1710_v41, %v3320_v14  ;;  %v1722_v59 = vmul.f32 %v1721_v54, %v3320_v14 }
 0x263   : > { %v3344_v8 = vmin.f32 %v1627_v43, 16.0  ;;  %v3346_v30 = vmin.f32 %v1667_v38, 16.0  ;;  %v1751_v13 = vmul.f32 %v1750_v16, %v3322_v47 }
 0x264   : > { %v1353_v18 = vpop.permute.xlu1 %1352  ;;  %v1712_v52 = vadd.f32 0.0036580483, %v1711_v46  ;;  %v1723_v20 = vadd.f32 0.014752088, %v1722_v59  ;;  %v1762_v1 = vmul.f32 %v1761_v21, %v3322_v47 }
 0x265   : > { %v1629_v45 = vmul.f32 2.1237322e-06, %v3344_v8  ;;  %v1669_v51 = vmul.f32 2.1237322e-06, %v3346_v30  ;;  %v1752_v33 = vadd.f32 0.0036580483, %v1751_v13  ;;  %v1373_v54 = vsel %vm1368_vm7, %v3292_v24, %v1353_v18 }
 0x266   : > { %v1724_v6 = vmul.f32 %v1723_v20, %v3320_v14  ;;  %v1713_v23 = vmul.f32 %v1712_v52, %v3320_v14  ;;  %v1763_v42 = vadd.f32 0.014752088, %v1762_v1  ;;  %v1369_v38 = vsel %vm1368_vm7, %v1353_v18, %v3292_v24 }
 0x267   : > { %v1630_v37 = vadd.f32 0.00028619796, %v1629_v45  ;;  %v1670_v62 = vadd.f32 0.00028619796, %v1669_v51  ;;  %v1753_v32 = vmul.f32 %v1752_v33, %v3322_v47  ;;  %v1380_v52 = vmul.f32 %v3278_v56, %v1373_v54 }
 0x268   : > { %v1725_v7 = vadd.f32 0.112945676, %v1724_v6  ;;  %v1764_v34 = vmul.f32 %v1763_v42, %v3322_v47  ;;  %v1714_v57 = vadd.f32 0.05243302, %v1713_v23  ;;  %v1379_v13 = vmul.f32 %v3273_v53, %v1369_v38 }
 0x269   : > { %v1631_v22 = vmul.f32 %v1630_v37, %v3344_v8  ;;  %v1671_v41 = vmul.f32 %v1670_v62, %v3346_v30  ;;  %v1754_v16 = vadd.f32 0.05243302, %v1753_v32  ;;  %v1680_v9 = vmul.f32 3.8918573e-05, %v3346_v30 }
 0x26a   : > { %v1726_v5 = vmul.f32 %v1725_v7, %v3320_v14  ;;  %v1765_v26 = vadd.f32 0.112945676, %v1764_v34  ;;  %v1715_v31 = vmul.f32 %v1714_v57, %v3320_v14 }
 0x26b   : > { %v1632_v43 = vadd.f32 0.0036580483, %v1631_v22  ;;  %v1672_v45 = vadd.f32 0.0036580483, %v1671_v41  ;;  %v1755_v19 = vmul.f32 %v1754_v16, %v3322_v47 }
 0x26c   : > { %v1393_v44 = vpop.permute.xlu1 %1392  ;;  %v1727_v10 = vadd.f32 0.4994258, %v1726_v5  ;;  %v1766_v40 = vmul.f32 %v1765_v26, %v3322_v47  ;;  %v1716_v20 = vadd.f32 0.18741608, %v1715_v31 }
 0x26d   : > { %v1405_v11 = vmul.f32 %v1393_v44, %v1381_v36  ;;  %v1406_v48 = vmul.f32 %v1393_v44, %v1382_v12  ;;  %v1633_v24 = vmul.f32 %v1632_v43, %v3344_v8  ;;  %v1673_v51 = vmul.f32 %v1672_v45, %v3346_v30 }
 0x26e   : > { %v1728_v2 = vmul.f32 %v1727_v10, %v3320_v14  ;;  %v1767_v60 = vadd.f32 0.4994258, %v1766_v40  ;;  %v1717_v42 = vmul.f32 %v1716_v20, %v3320_v14  ;;  %v1681_v12 = vadd.f32 0.001143296, %v1680_v9 }
 0x26f   : > { %v1413_v17 = vadd.f32 %v1405_v11, %v1346_v25  ;;  %v1414_v63 = vadd.f32 %v1406_v48, %v1347_v27  ;;  %v1640_v27 = vmul.f32 3.8918573e-05, %v3344_v8  ;;  %v1634_v37 = vadd.f32 0.05243302, %v1633_v24 }
 0x270   : > { %v3377_v25 = vadd.f32 1.0, %v1728_v2  ;;  %v1768_v36 = vmul.f32 %v1767_v60, %v3322_v47  ;;  %v1756_v44 = vadd.f32 0.18741608, %v1755_v19  ;;  %v1718_v62 = vadd.f32 1.1283791, %v1717_v42 }
 0x271   : > { %v3367_v35 = vadd.f32 %v1431_v0, %v1413_v17  ;;  %v3369_v55 = vadd.f32 %v1431_v0, %v1414_v63  ;;  %v1641_v1 = vadd.f32 0.001143296, %v1640_v27  ;;  %v1674_v32 = vadd.f32 0.05243302, %v1673_v51 }
 0x272   : > { %2082 = vrcp.f32 %v3377_v25  ;;  %v3410_v48 = vadd.f32 1.0, %v1768_v36  ;;  %v1739_v10 = vand.u32 2147483647, %v3377_v25  ;;  %vm1735_vm9 = vweird.f32 %v3377_v25 }
 0x273   : > { %v3384_v21 = vmul.f32 0.70710677, %v3367_v35  ;;  %v3387_v46 = vmul.f32 0.70710677, %v3369_v55  ;;  %v1642_v7 = vmul.f32 %v1641_v1, %v3344_v8  ;;  %v1635_v27 = vmul.f32 %v1634_v37, %v3344_v8 }
 0x274   : > { %v1389_v59 = vpop.permute.xlu1 %1388  ;;  %2084 = vrcp.f32 %v3410_v48  ;;  %v1757_v38 = vmul.f32 %v1756_v44, %v3322_v47  ;;  %vm1740_vm11 = vcmp.eq.f32.partialorder %v1739_v10, 8.507059e+37  ;;  %v1675_v60 = vmul.f32 %v1674_v32, %v3346_v30 }
 0x275   : > { %v1404_v18 = vmul.f32 %v1389_v59, %v1380_v52  ;;  %v1547_v6 = vmul.f32 %v3384_v21, %v3384_v21  ;;  %v1587_v23 = vmul.f32 %v3387_v46, %v3387_v46  ;;  %v1403_v56 = vmul.f32 %v1389_v59, %v1379_v13 }
 0x276   : > { %v1643_v17 = vadd.f32 0.014752088, %v1642_v7  ;;  %v1719_v59 = vmul.f32 %v1718_v62, %v3309_v15  ;;  %v1636_v19 = vadd.f32 0.18741608, %v1635_v27  ;;  %v1457_v15 = vmul.f32 0.5, %v3296_v28 }
 0x277   : > { %v1412_v33 = vadd.f32 %v1404_v18, %v3251_v39  ;;  %v3405_v5 = vmin.f32 %v1547_v6, 16.0  ;;  %v3407_v11 = vmin.f32 %v1587_v23, 16.0  ;;  %v1411_v14 = vadd.f32 %v1403_v56, %v3249_v49 }
 0x278   : > { %v2083_v53 = vpop.eup %2082  ;;  %v1741_v39 = vand.u32 2147483648, %v3377_v25  ;;  %v1682_v49 = vmul.f32 %v1681_v12, %v3346_v30  ;;  %v1644_v16 = vmul.f32 %v1643_v17, %v3344_v8  ;;  %v1758_v56 = vadd.f32 1.1283791, %v1757_v38 }
 0x279   : > { %v1731_v34 = vmul.f32 %v2083_v53, %v3377_v25  ;;  %vm1736_vm8 = vweird.f32 %v2083_v53  ;;  %v1549_v2 = vmul.f32 2.1237322e-06, %v3405_v5  ;;  %v1589_v31 = vmul.f32 2.1237322e-06, %v3407_v11 }
 0x27a   : > { %vm1737_vm10 = vmor %vm1735_vm9, %vm1736_vm8  ;;  %v1742_v43 = vor.u32 1.1754944e-38, %v1741_v39  ;;  %v1683_v20 = vadd.f32 0.014752088, %v1682_v49  ;;  %v2085_v9 = vpop.eup %2084  ;;  %v1645_v18 = vadd.f32 0.112945676, %v1644_v16  ;;  %v1781_v28 = vand.u32 2147483648, %v3410_v48 }
 0x27b   : > { %v1732_v0 = vsub.f32 1.0, %v1731_v34  ;;  %v1550_v45 = vadd.f32 0.00028619796, %v1549_v2  ;;  %v1590_v13 = vadd.f32 0.00028619796, %v1589_v31  ;;  %v1771_v6 = vmul.f32 %v2085_v9, %v3410_v48 }
 0x27c   : > { %v1646_v42 = vmul.f32 %v1645_v18, %v3344_v8  ;;  %v1684_v36 = vmul.f32 %v1683_v20, %v3346_v30  ;;  %vm1776_vm12 = vweird.f32 %v2085_v9  ;;  %vm1775_vm13 = vweird.f32 %v3410_v48 }
 0x27d   : > { %v1426_v57 = vpop.permute.xlu1 %1425  ;;  %v1733_v63 = vmul.f32 %v2083_v53, %v1732_v0  ;;  %v1551_v51 = vmul.f32 %v1550_v45, %v3405_v5  ;;  %v1591_v7 = vmul.f32 %v1590_v13, %v3407_v11  ;;  %v1772_v12 = vsub.f32 1.0, %v1771_v6  ;;  %vm1777_vm14 = vmor %vm1775_vm13, %vm1776_vm12 }
 0x27e   : > { %v3413_v26 = vadd.f32 %v1426_v57, %v1411_v14  ;;  %v3415_v22 = vadd.f32 %v1426_v57, %v1412_v33  ;;  %v1779_v14 = vand.u32 2147483647, %v3410_v48  ;;  %v1647_v57 = vadd.f32 0.4994258, %v1646_v42 }
 0x27f   : > { %v1734_v54 = vadd.f32 %v2083_v53, %v1733_v63  ;;  %v1773_v44 = vmul.f32 %v2085_v9, %v1772_v12  ;;  %v1759_v0 = vmul.f32 %v1758_v56, %v3312_v50  ;;  %v1685_v10 = vadd.f32 0.112945676, %v1684_v36 }
 0x280   : > { %v3423_v40 = vmul.f32 0.70710677, %v3413_v26  ;;  %v3426_v41 = vmul.f32 0.70710677, %v3415_v22  ;;  %v1552_v39 = vadd.f32 0.0036580483, %v1551_v51  ;;  %v1648_v49 = vmul.f32 %v1647_v57, %v3344_v8 }
 0x281   : > { %v1738_v52 = vsel %vm1737_vm10, %v2083_v53, %v1734_v54  ;;  %v1676_v53 = vadd.f32 0.18741608, %v1675_v60  ;;  %v1592_v17 = vadd.f32 0.0036580483, %v1591_v7  ;;  %v1774_v63 = vadd.f32 %v2085_v9, %v1773_v44 }
 0x282   : > { %v1743_v1 = vsel %vm1740_vm11, %v1742_v43, %v1738_v52  ;;  %v1467_v25 = vmul.f32 %v3423_v40, %v3423_v40  ;;  %v1507_v24 = vmul.f32 %v3426_v41, %v3426_v41  ;;  %v1782_v31 = vor.u32 1.1754944e-38, %v1781_v28 }
 0x283   : > { %v1744_v47 = vmul.f32 %v1743_v1, %v1719_v59  ;;  %v1686_v54 = vmul.f32 %v1685_v10, %v3346_v30  ;;  %v1778_v27 = vsel %vm1777_vm14, %v2085_v9, %v1774_v63  ;;  %vm1780_vm15 = vcmp.eq.f32.partialorder %v1779_v14, 8.507059e+37 }
 0x284   : > { %v3444_v37 = vmin.f32 %v1467_v25, 16.0  ;;  %v3446_v33 = vmin.f32 %v1507_v24, 16.0  ;;  %v3456_v50 = vadd.f32 1.0, %v1648_v49  ;;  %v1560_v48 = vmul.f32 3.8918573e-05, %v3405_v5 }
 0x285   : > { %v1958_v23 = vclamps-f32 %v1744_v47, 1.0  ;;  %v1637_v43 = vmul.f32 %v1636_v19, %v3344_v8  ;;  %v1677_v38 = vmul.f32 %v1676_v53, %v3346_v30  ;;  %v1783_v16 = vsel %vm1780_vm15, %v1782_v31, %v1778_v27 }
 0x286   : > { %v1469_v32 = vmul.f32 2.1237322e-06, %v3444_v37  ;;  %v1509_v2 = vmul.f32 2.1237322e-06, %v3446_v33  ;;  %v1687_v59 = vadd.f32 0.4994258, %v1686_v54  ;;  %v1553_v52 = vmul.f32 %v1552_v39, %v3405_v5 }
 0x287   : > { %v1793_v34 = vadd.f32 1.0, %v1958_v23  ;;  %v1784_v20 = vmul.f32 %v1783_v16, %v1759_v0  ;;  %2086 = vrcp.f32 %v3456_v50  ;;  %v1593_v60 = vmul.f32 %v1592_v17, %v3407_v11 }
 0x288   : > { %v1470_v45 = vadd.f32 0.00028619796, %v1469_v32  ;;  %v1510_v13 = vadd.f32 0.00028619796, %v1509_v2  ;;  %v1688_v1 = vmul.f32 %v1687_v59, %v3346_v30  ;;  %v1561_v25 = vadd.f32 0.001143296, %v1560_v48 }
 0x289   : > { %v1801_v62 = vmul.f32 %v1793_v34, %v1457_v15  ;;  %v1959_v9 = vclamps-f32 %v1784_v20, 1.0  ;;  %v1600_v24 = vmul.f32 3.8918573e-05, %v3407_v11  ;;  %v1638_v8 = vadd.f32 1.1283791, %v1637_v43 }
 0x28a   : > { %v1678_v47 = vadd.f32 1.1283791, %v1677_v38  ;;  %v1458_v18 = vmul.f32 0.5, %v3298_v58  ;;  %v3467_v19 = vadd.f32 1.0, %v1688_v1  ;;  %v1554_v15 = vadd.f32 0.05243302, %v1553_v52 }
 0x28b   : > { %1826 = vmatpush.msra.mxu0 %v1801_v62  ;;  %v1794_v6 = vadd.f32 1.0, %v1959_v9  ;;  %v1562_v23 = vmul.f32 %v1561_v25, %v3405_v5  ;;  %v1601_v56 = vadd.f32 0.001143296, %v1600_v24  ;;  %v1594_v42 = vadd.f32 0.05243302, %v1593_v60 }
 0x28c   : > { %v1471_v36 = vmul.f32 %v1470_v45, %v3444_v37  ;;  %v1511_v30 = vmul.f32 %v1510_v13, %v3446_v33  ;;  %2088 = vrcp.f32 %v3467_v19  ;;  %v3474_v7 = vmul.f32 0.5, %v3324_v4 }
 0x28d   : > { %v2087_v53 = vpop.eup %2086  ;;  %v1802_v51 = vmul.f32 %v1794_v6, %v1458_v18  ;;  %v1563_v58 = vadd.f32 0.014752088, %v1562_v23  ;;  %v1480_v12 = vmul.f32 3.8918573e-05, %v3444_v37  ;;  %v1639_v34 = vmul.f32 %v1638_v8, %v3332_v3 }
 0x28e   : > { %v3479_v28 = vmul.f32 %v1678_v47, %v3335_v61  ;;  %v1651_v44 = vmul.f32 %v2087_v53, %v3456_v50  ;;  %v1659_v14 = vand.u32 2147483647, %v3456_v50  ;;  %v1555_v57 = vmul.f32 %v1554_v15, %v3405_v5 }
 0x28f   : > { %1846 = vmatpush.msra.mxu1 %v1802_v51  ;;  %v1661_v62 = vand.u32 2147483648, %v3456_v50  ;;  %v1564_v4 = vmul.f32 %v1563_v58, %v3405_v5  ;;  %v1602_v0 = vmul.f32 %v1601_v56, %v3407_v11  ;;  %v3488_v10 = vmul.f32 %v1594_v42, %v3407_v11 }
 0x290   : > { %v1472_v3 = vadd.f32 0.0036580483, %v1471_v36  ;;  %v1512_v39 = vadd.f32 0.0036580483, %v1511_v30  ;;  %v1652_v61 = vsub.f32 1.0, %v1651_v44  ;;  %vm1655_vm0 = vweird.f32 %v3456_v50 }
 0x291   : > { %v1565_v17 = vadd.f32 0.112945676, %v1564_v4  ;;  %v1603_v63 = vadd.f32 0.014752088, %v1602_v0  ;;  %v1481_v49 = vadd.f32 0.001143296, %v1480_v12  ;;  %vm1656_vm1 = vweird.f32 %v2087_v53 }
 0x292   : > { %v2089_v32 = vpop.eup %2088  ;;  %v1653_v2 = vmul.f32 %v2087_v53, %v1652_v61  ;;  %vm3491_vm2 = vcmp.eq.f32.partialorder %v1659_v14, 8.507059e+37  ;;  %v1520_v54 = vmul.f32 3.8918573e-05, %v3446_v33  ;;  %v1662_v27 = vor.u32 1.1754944e-38, %v1661_v62  ;;  %vm1657_vm3 = vmor %vm1655_vm0, %vm1656_vm1 }
 0x293   : > { %v1691_v48 = vmul.f32 %v2089_v32, %v3467_v19  ;;  %v1566_v43 = vmul.f32 %v1565_v17, %v3405_v5  ;;  %v1604_v38 = vmul.f32 %v1603_v63, %v3407_v11  ;;  %v1699_v59 = vand.u32 2147483647, %v3467_v19 }
 0x294   : > { %v1654_v16 = vadd.f32 %v2087_v53, %v1653_v2  ;;  %v1482_v52 = vmul.f32 %v1481_v49, %v3444_v37  ;;  %v1521_v20 = vadd.f32 0.001143296, %v1520_v54  ;;  %v1701_v45 = vand.u32 2147483648, %v3467_v19 }
 0x295   : > { %v1692_v60 = vsub.f32 1.0, %v1691_v48  ;;  %v1567_v13 = vadd.f32 0.4994258, %v1566_v43  ;;  %v1605_v1 = vadd.f32 0.112945676, %v1604_v38  ;;  %vm1696_vm4 = vweird.f32 %v2089_v32 }
 0x296   : > { %v1658_v9 = vsel %vm1657_vm3, %v2087_v53, %v1654_v16  ;;  %v1483_v25 = vadd.f32 0.014752088, %v1482_v52  ;;  %v1522_v24 = vmul.f32 %v1521_v20, %v3446_v33  ;;  %v1473_v50 = vmul.f32 %v1472_v3, %v3444_v37 }
 0x297   : > { %v1663_v8 = vsel %vm3491_vm2, %v1662_v27, %v1658_v9  ;;  %v1693_v47 = vmul.f32 %v2089_v32, %v1692_v60  ;;  %v1568_v18 = vmul.f32 %v1567_v13, %v3405_v5  ;;  %v1606_v15 = vmul.f32 %v1605_v1, %v3407_v11 }
 0x298   : > { %v1664_v6 = vmul.f32 %v1663_v8, %v1639_v34  ;;  %v1484_v23 = vmul.f32 %v1483_v25, %v3444_v37  ;;  %v1523_v56 = vadd.f32 0.014752088, %v1522_v24  ;;  %vm1695_vm5 = vweird.f32 %v3467_v19 }
 0x299   : > { %v1694_v42 = vadd.f32 %v2089_v32, %v1693_v47  ;;  %v3512_v36 = vadd.f32 1.0, %v1568_v18  ;;  %v1607_v30 = vadd.f32 0.4994258, %v1606_v15  ;;  %vm1697_vm6 = vmor %vm1695_vm5, %vm1696_vm4  ;;  %v1702_v51 = vor.u32 1.1754944e-38, %v1701_v45 }
 0x29a   : > { %v1956_v53 = vclamps-f32 %v1664_v6, 1.0  ;;  %v1485_v58 = vadd.f32 0.112945676, %v1484_v23  ;;  %v1524_v12 = vmul.f32 %v1523_v56, %v3446_v33  ;;  %v1556_v44 = vadd.f32 0.18741608, %v1555_v57 }
 0x29b   : > { %v1698_v14 = vsel %vm1697_vm6, %v2089_v32, %v1694_v42  ;;  %vm1700_vm7 = vcmp.eq.f32.partialorder %v1699_v59, 8.507059e+37  ;;  %2090 = vrcp.f32 %v3512_v36  ;;  %v1513_v34 = vmul.f32 %v1512_v39, %v3446_v33 }
 0x29c   : > { %v1791_v62 = vadd.f32 1.0, %v1956_v53  ;;  %v1703_v4 = vsel %vm1700_vm7, %v1702_v51, %v1698_v14  ;;  %v1608_v19 = vmul.f32 %v1607_v30, %v3407_v11  ;;  %v1474_v0 = vadd.f32 0.05243302, %v1473_v50 }
 0x29d   : > { %v1704_v3 = vmul.f32 %v1703_v4, %v3479_v28  ;;  %v1486_v61 = vmul.f32 %v1485_v58, %v3444_v37  ;;  %v1525_v17 = vadd.f32 0.112945676, %v1524_v12  ;;  %v1456_v57 = vmul.f32 0.5, %v3326_v29 }
 0x29e   : > { %v1799_v63 = vmul.f32 %v1791_v62, %v3474_v7  ;;  %v3522_v49 = vadd.f32 1.0, %v1608_v19  ;;  %v1557_v31 = vmul.f32 %v1556_v44, %v3405_v5  ;;  %v1596_v54 = vadd.f32 0.18741608, %v3488_v10 }
 0x29f   : > { %v1957_v32 = vclamps-f32 %v1704_v3, 1.0  ;;  %v1487_v2 = vadd.f32 0.4994258, %v1486_v61  ;;  %v1526_v39 = vmul.f32 %v1525_v17, %v3446_v33  ;;  %v1514_v27 = vadd.f32 0.05243302, %v1513_v34 }
 0x2a0   : > { %1827 = vmatpush.msra.mxu0 %v1799_v63  ;;  %2092 = vrcp.f32 %v3522_v49  ;;  %v1475_v48 = vmul.f32 %v1474_v0, %v3444_v37  ;;  %v1558_v52 = vadd.f32 1.1283791, %v1557_v31  ;;  %v1597_v10 = vmul.f32 %v1596_v54, %v3407_v11 }
 0x2a1   : > { %v2091_v28 = vpop.eup %2090  ;;  %v1792_v7 = vadd.f32 1.0, %v1957_v32  ;;  %v1488_v43 = vmul.f32 %v1487_v2, %v3444_v37  ;;  %v1527_v38 = vadd.f32 0.4994258, %v1526_v39  ;;  %v1515_v45 = vmul.f32 %v1514_v27, %v3446_v33 }
 0x2a2   : > { %v1571_v29 = vmul.f32 %v2091_v28, %v3512_v36  ;;  %v1476_v60 = vadd.f32 0.18741608, %v1475_v48  ;;  %v1581_v13 = vand.u32 2147483648, %v3512_v36  ;;  %vm1576_vm8 = vweird.f32 %v2091_v28 }
 0x2a3   : > { %v1800_v16 = vmul.f32 %v1792_v7, %v1456_v57  ;;  %v3532_v59 = vadd.f32 1.0, %v1488_v43  ;;  %v1528_v5 = vmul.f32 %v1527_v38, %v3446_v33  ;;  %v1579_v25 = vand.u32 2147483647, %v3512_v36 }
 0x2a4   : > { %v1572_v20 = vsub.f32 1.0, %v1571_v29  ;;  %v1598_v47 = vadd.f32 1.1283791, %v1597_v10  ;;  %vm1575_vm9 = vweird.f32 %v3512_v36  ;;  %v1477_v18 = vmul.f32 %v1476_v60, %v3444_v37 }
 0x2a5   : > { %1847 = vmatpush.msra.mxu1 %v1800_v16  ;;  %2094 = vrcp.f32 %v3532_v59  ;;  %v3540_v24 = vadd.f32 1.0, %v1528_v5  ;;  %v1516_v15 = vadd.f32 0.18741608, %v1515_v45  ;;  %vm1577_vm10 = vmor %vm1575_vm9, %vm1576_vm8  ;;  %v1582_v50 = vor.u32 1.1754944e-38, %v1581_v13 }
 0x2a6   : > { %v2093_v1 = vpop.eup %2092  ;;  %v1573_v9 = vmul.f32 %v2091_v28, %v1572_v20  ;;  %v1559_v23 = vmul.f32 %v1558_v52, %v3384_v21  ;;  %vm1580_vm11 = vcmp.eq.f32.partialorder %v1579_v25, 8.507059e+37  ;;  %v1621_v42 = vand.u32 2147483648, %v3522_v49 }
 0x2a7   : > { %v1611_v8 = vmul.f32 %v2093_v1, %v3522_v49  ;;  %2096 = vrcp.f32 %v3540_v24  ;;  %vm1616_vm12 = vweird.f32 %v2093_v1  ;;  %v1619_v36 = vand.u32 2147483647, %v3522_v49 }
 0x2a8   : > { %v1574_v11 = vadd.f32 %v2091_v28, %v1573_v9  ;;  %v1453_v58 = vmul.f32 0.5, %v3367_v35  ;;  %v1599_v37 = vmul.f32 %v1598_v47, %v3387_v46  ;;  %v1478_v14 = vadd.f32 1.1283791, %v1477_v18 }
 0x2a9   : > { %v1612_v6 = vsub.f32 1.0, %v1611_v8  ;;  %v1517_v21 = vmul.f32 %v1516_v15, %v3446_v33  ;;  %vm1615_vm13 = vweird.f32 %v3522_v49  ;;  %v1622_v19 = vor.u32 1.1754944e-38, %v1621_v42 }
 0x2aa   : > { %v1578_v56 = vsel %vm1577_vm10, %v2091_v28, %v1574_v11  ;;  %vm1617_vm14 = vmor %vm1615_vm13, %vm1616_vm12  ;;  %v1501_v3 = vand.u32 2147483648, %v3532_v59  ;;  %vm1620_vm15 = vcmp.eq.f32.partialorder %v1619_v36, 8.507059e+37  ;;  %v1499_v35 = vand.u32 2147483647, %v3532_v59 }
 0x2ab   : > { %v2095_v30 = vpop.eup %2094  ;;  %v1583_v53 = vsel %vm1580_vm11, %v1582_v50, %v1578_v56  ;;  %v1613_v51 = vmul.f32 %v2093_v1, %v1612_v6  ;;  %v1518_v33 = vadd.f32 1.1283791, %v1517_v21  ;;  %vm1495_vm1 = vweird.f32 %v3532_v59 }
 0x2ac   : > { %v1584_v12 = vmul.f32 %v1583_v53, %v1559_v23  ;;  %v1491_v44 = vmul.f32 %v2095_v30, %v3532_v59  ;;  %vm1496_vm0 = vweird.f32 %v2095_v30  ;;  %v1502_v31 = vor.u32 1.1754944e-38, %v1501_v3 }
 0x2ad   : > { %v1614_v34 = vadd.f32 %v2093_v1, %v1613_v51  ;;  %v2097_v62 = vpop.eup %2096  ;;  %v1541_v54 = vand.u32 2147483648, %v3540_v24  ;;  %vm1497_vm2 = vmor %vm1495_vm1, %vm1496_vm0  ;;  %v1539_v48 = vand.u32 2147483647, %v3540_v24  ;;  %v1454_v7 = vmul.f32 0.5, %v3369_v55 }
 0x2ae   : > { %v1954_v4 = vclamps-f32 %v1584_v12, 1.0  ;;  %v1492_v0 = vsub.f32 1.0, %v1491_v44  ;;  %v1531_v46 = vmul.f32 %v2097_v62, %v3540_v24  ;;  %vm1536_vm3 = vweird.f32 %v2097_v62 }
 0x2af   : > { %v1618_v61 = vsel %vm1617_vm14, %v2093_v1, %v1614_v34  ;;  %v1479_v43 = vmul.f32 %v1478_v14, %v3423_v40  ;;  %vm1500_vm4 = vcmp.eq.f32.partialorder %v1499_v35, 8.507059e+37  ;;  %vm1535_vm5 = vweird.f32 %v3540_v24  ;;  %v1803_v24 = vld [vmem:[%s3607_s6] sm:$0xf] }
 0x2b0   : > { %v1789_v17 = vadd.f32 1.0, %v1954_v4  ;;  %v1623_v63 = vsel %vm1620_vm15, %v1622_v19, %v1618_v61  ;;  %v1493_v57 = vmul.f32 %v2095_v30, %v1492_v0  ;;  %v1532_v49 = vsub.f32 1.0, %v1531_v46  ;;  %vm1537_vm6 = vmor %vm1535_vm5, %vm1536_vm3 }
 0x2b1   : > { %v1624_v32 = vmul.f32 %v1623_v63, %v1599_v37  ;;  %v1542_v52 = vor.u32 1.1754944e-38, %v1541_v54  ;;  %v1519_v10 = vmul.f32 %v1518_v33, %v3426_v41  ;;  %vm1540_vm7 = vcmp.eq.f32.partialorder %v1539_v48, 8.507059e+37 }
 0x2b2   : > { %v1797_v2 = vmul.f32 %v1789_v17, %v1453_v58  ;;  %v1494_v39 = vadd.f32 %v2095_v30, %v1493_v57  ;;  %v1533_v28 = vmul.f32 %v2097_v62, %v1532_v49  ;;  %v1451_v13 = vmul.f32 0.5, %v3413_v26  ;;  %v1808_v26 = vpop.permute.xlu2 %1807 }
 0x2b3   : > { %v1955_v27 = vclamps-f32 %v1624_v32, 1.0  ;;  %vm1810_vm8 = vcmask 261120   ;;  %v1452_v41 = vmul.f32 0.5, %v3415_v22  ;;  %vm1857_vm9 = vcmask 1043456  }
 0x2b4   : > { %1828 = vmatpush.msra.mxu0 %v1797_v2  ;;  %v1498_v38 = vsel %vm1497_vm2, %v2095_v30, %v1494_v39  ;;  %v1534_v59 = vadd.f32 %v2097_v62, %v1533_v28 }
 0x2b5   : > { %v1790_v29 = vadd.f32 1.0, %v1955_v27  ;;  %v1503_v16 = vsel %vm1500_vm4, %v1502_v31, %v1498_v38 }
 0x2b6   : > { %v1504_v5 = vmul.f32 %v1503_v16, %v1479_v43  ;;  %v1538_v60 = vsel %vm1537_vm6, %v2097_v62, %v1534_v59 }
 0x2b7   : > { %v1798_v20 = vmul.f32 %v1790_v29, %v1454_v7  ;;  %v1543_v55 = vsel %vm1540_vm7, %v1542_v52, %v1538_v60 }
 0x2b8   : > { %v1952_v45 = vclamps-f32 %v1504_v5, 1.0  ;;  %v1544_v40 = vmul.f32 %v1543_v55, %v1519_v10 }
 0x2b9   : > { %1848 = vmatpush.msra.mxu1 %v1798_v20 }
 0x2ba   : > { %v1787_v1 = vadd.f32 1.0, %v1952_v45  ;;  %v1953_v9 = vclamps-f32 %v1544_v40, 1.0 }
 0x2bc   : > { %v1795_v25 = vmul.f32 %v1787_v1, %v1451_v13  ;;  %v1788_v8 = vadd.f32 1.0, %v1953_v9 }
 0x2be   : > { %1829 = vmatpush.msra.mxu0 %v1795_v25  ;;  %v1796_v47 = vmul.f32 %v1788_v8, %v1452_v41 }
 0x2bf   : > { %1960 = vmatmul.msk.f32.vlgmr.msra.gmra.mxu0 %vm1810_vm8, %v1803_v24 }
 0x2c0   : > { %1849 = vmatpush.msra.mxu1 %v1796_v47 }
 0x2c1   : > { %1961 = vmatmul.msk.f32.vlgmr.msra.gmra.mxu1 %vm1810_vm8, %v1803_v24 }
 0x33c   : > { %v1831_v11 = vpop.f32.mrf.mxu0 }
 0x33d   : > { %v1832_v22 = vadd.f32 %v1831_v11, %v1808_v26 }
 0x33e   : > { %v1851_v18 = vpop.f32.mrf.mxu1 }
 0x33f   : > { %v1852_v15 = vadd.f32 %v1851_v18, %v1808_v26 }
 0x341   : > { %v1856_v50 = vrot.slane %v1852_v15, 4 }
 0x343   : > { %v1858_v6 = vsel %vm1857_vm9, %v1832_v22, %v1856_v50 }
 0x344   : > { %1860 = vst [vmem:[%s299_s23] sm:$0xff] %v1858_v6 }
 0x345   : > { %2129 = shalt.err (!%p2126_p3)
}
 0x346   : > { %1968 = dma.vmem_to_hbm [thread:$0]  (%p2266_p5), %s1876_s24, 128, %s1878_s25, %s1862_s9  }
 0x347 PF: > { %p1974_p4 = scmp.ge.s32.totalorder %s2164_s30, 2  ;;  %s1889_s17 = sand.u32 1, %s2152_s27  }
 0x348   : > { %s1890_s21 = scalar_lea.sflag [#allocation3], %s1889_s17 }
 0x349   : > { %p1971_p7 = pnand %p1974_p4, %p2270_p6 }
 0x34b   : > { %p1972_p8 = pneg %p1971_p7 }
 0x34d   : > { %2147 = dma.done.wait (%p1972_p8), %s1890_s21, 128  }
 0x34e   : > { %2149 = vsyncadd (%p1972_p8), %s1890_s21, 4294967168  ;;  %p18_p9 = scmp.ge.s32.totalorder %s2253_s11, 4   ;;  %s3620_s27 = smov %s2156_s28 }
 0x34f   : > { %s3621_s28 = smov %s2160_s29  ;;  %s3622_s29 = smov %s2264_s14 }
 0x350   : > { %s3623_s30 = smov %s2253_s11  ;;  %20 = sbr.rel (!%p18_p9) target bundleno = 3 (0x3), region = 87 }
 0x355   :  { %1896 = vsyncpa [#allocation3], 1 }
 0x356   :  { %1898 = vsyncpa [#allocation3 + $0x1], 1 }

</bundles_post_ra>
